<compile_context>
chip_gen: v6e
topology: v6e:2x2x1
jax: 0.10.0
libtpu: 0.0.40
codegen_flags: <defaults>
</compile_context>

<pallas_src>
import functools
import math

import jax
import jax.numpy as jnp
from jax import lax
from jax.experimental import pallas as pl
from jax.experimental.pallas import tpu as pltpu


# --------------------------------------------------------------------------
# Generation-aware tiling / VMEM configuration
# --------------------------------------------------------------------------
@functools.lru_cache(maxsize=None)
def _tpu_config():
    """Returns (vmem_limit_bytes, tm_target, tn_target, tk_target)."""
    vmem_cap = 128 * 1024 * 1024
    try:
        vmem_cap = int(pltpu.get_tpu_info().vmem_capacity_bytes)
    except Exception:
        pass
    kind = ""
    try:
        kind = jax.devices()[0].device_kind.lower()
    except Exception:
        pass
    # 75% of physical VMEM (headroom for Mosaic internal scratch), <= 96 MiB.
    vmem_limit = min((vmem_cap * 3) // 4, 96 * 1024 * 1024)
    if vmem_cap <= 64 * 1024 * 1024:
        # v7x: balance point ~311 flop/byte, only 64 MiB physical VMEM.
        tm, tn, tk = 1024, 1024, 512
    elif "v5" in kind:
        # v5e: balance point ~240 flop/byte -> 512x512 already MXU-bound.
        # TODO(synk): pl.Buffered(3) on the K-streamed x/w specs if the DMA
        # shows exposed in a profile (cheap VMEM, hides slower v5e HBM).
        tm, tn, tk = 512, 512, 512
    else:
        # v6e (and default): balance point ~680 flop/byte -> big tiles.
        tm, tn, tk = 2048, 1024, 512
    return vmem_limit, tm, tn, tk


# --------------------------------------------------------------------------
# Tiling helpers
# --------------------------------------------------------------------------
def _round_up(x, m):
    return ((x + m - 1) // m) * m


def _pick_tile(dim, target, align):
    """Largest tile <= target that divides `dim` and is a multiple of `align`,
    falling back to the full dimension.  Used only for model dims (D, 3D,
    d_ff), which are bounded and tile-friendly."""
    if dim <= target:
        return dim
    t = (target // align) * align
    while t >= align:
        if dim % t == 0:
            return t
        t -= align
    return dim


def _row_tiling(M, target, align):
    """Row-tile size and padded row count.  Never falls back to a single huge
    unaligned tile: an awkward M gets zero-padded to a tile multiple."""
    if M <= target:
        t = _round_up(max(M, align), align)
        return t, t
    t = (target // align) * align
    while t >= align:
        if M % t == 0:
            return t, M
        t -= align
    t = (target // align) * align
    return t, _round_up(M, t)


def _pad_rows(x, rows):
    if x.shape[0] == rows:
        return x
    return jnp.pad(x, ((0, rows - x.shape[0]),) + ((0, 0),) * (x.ndim - 1))


# --------------------------------------------------------------------------
# Tiled dense:  y = act(x @ w + b)
# --------------------------------------------------------------------------
def _dense_kernel(x_ref, w_ref, b_ref, o_ref, acc_ref, *, activation):
    k = pl.program_id(2)

    @pl.when(k == 0)
    def _():
        acc_ref[...] = jnp.zeros_like(acc_ref)

    acc_ref[...] += jnp.dot(x_ref[...], w_ref[...],
                            preferred_element_type=jnp.float32)

    @pl.when(k == pl.num_programs(2) - 1)
    def _():
        y = acc_ref[...] + b_ref[...]
        if activation == "relu":
            y = jnp.maximum(y, 0.0)
        elif activation == "tanh":
            y = jnp.tanh(y)
        o_ref[...] = y.astype(o_ref.dtype)


def dense(x, w, b, activation=None, out_dtype=jnp.bfloat16):
    """x: (M, K) bf16, w: (K, N) bf16, b: (1, N) f32 -> (M, N) out_dtype."""
    vmem_limit, tm_t, tn_t, tk_t = _tpu_config()
    M, K = x.shape
    N = w.shape[1]
    tm, Mp = _row_tiling(M, tm_t, 16)
    tn = _pick_tile(N, tn_t, 128)
    tk = _pick_tile(K, tk_t, 128)
    xp = _pad_rows(x, Mp)
    grid = (Mp // tm, N // tn, K // tk)
    out = pl.pallas_call(
        functools.partial(_dense_kernel, activation=activation),
        out_shape=jax.ShapeDtypeStruct((Mp, N), out_dtype),
        grid=grid,
        in_specs=[
            pl.BlockSpec((tm, tk), lambda i, j, k: (i, k)),
            pl.BlockSpec((tk, tn), lambda i, j, k: (k, j)),
            pl.BlockSpec((1, tn), lambda i, j, k: (0, j)),
        ],
        out_specs=pl.BlockSpec((tm, tn), lambda i, j, k: (i, j)),
        scratch_shapes=[pltpu.VMEM((tm, tn), jnp.float32)],
        compiler_params=pltpu.CompilerParams(
            dimension_semantics=("parallel", "parallel", "arbitrary"),
            vmem_limit_bytes=vmem_limit),
    )(xp, w, b)
    return out if Mp == M else out[:M]


# --------------------------------------------------------------------------
# Tiled dense with fused residual-add + LayerNorm epilogue:
#   y = LayerNorm(residual + x @ w + b)
# N (= model dim) stays a single lane-dense tile so the LN reduction sees the
# whole feature axis.
# --------------------------------------------------------------------------
def _dense_ln_kernel(x_ref, w_ref, b_ref, res_ref, g_ref, bt_ref, o_ref,
                     acc_ref, *, eps):
    k = pl.program_id(1)

    @pl.when(k == 0)
    def _():
        acc_ref[...] = jnp.zeros_like(acc_ref)

    acc_ref[...] += jnp.dot(x_ref[...], w_ref[...],
                            preferred_element_type=jnp.float32)

    @pl.when(k == pl.num_programs(1) - 1)
    def _():
        y = acc_ref[...] + b_ref[...] + res_ref[...].astype(jnp.float32)
        mu = jnp.mean(y, axis=-1, keepdims=True)
        yc = y - mu
        var = jnp.mean(yc * yc, axis=-1, keepdims=True)
        yn = yc * lax.rsqrt(var + eps)
        o_ref[...] = (yn * g_ref[...] + bt_ref[...]).astype(o_ref.dtype)


def dense_add_layernorm(x, w, b, residual, gamma, beta, eps,
                        out_dtype=jnp.bfloat16):
    vmem_limit, tm_t, _, tk_t = _tpu_config()
    M, K = x.shape
    N = w.shape[1]
    tm, Mp = _row_tiling(M, tm_t, 16)
    tk = _pick_tile(K, tk_t, 128)
    xp = _pad_rows(x, Mp)
    rp = _pad_rows(residual, Mp)
    grid = (Mp // tm, K // tk)
    out = pl.pallas_call(
        functools.partial(_dense_ln_kernel, eps=eps),
        out_shape=jax.ShapeDtypeStruct((Mp, N), out_dtype),
        grid=grid,
        in_specs=[
            pl.BlockSpec((tm, tk), lambda i, k: (i, k)),
            pl.BlockSpec((tk, N), lambda i, k: (k, 0)),
            pl.BlockSpec((1, N), lambda i, k: (0, 0)),
            pl.BlockSpec((tm, N), lambda i, k: (i, 0)),
            pl.BlockSpec((1, N), lambda i, k: (0, 0)),
            pl.BlockSpec((1, N), lambda i, k: (0, 0)),
        ],
        out_specs=pl.BlockSpec((tm, N), lambda i, k: (i, 0)),
        scratch_shapes=[pltpu.VMEM((tm, N), jnp.float32)],
        compiler_params=pltpu.CompilerParams(
            dimension_semantics=("parallel", "arbitrary"),
            vmem_limit_bytes=vmem_limit),
    )(xp, w, b, rp, gamma, beta)
    return out if Mp == M else out[:M]


# --------------------------------------------------------------------------
# Row-tiled LayerNorm (used for the embedding LN where there is no matmul to
# fuse into).  Row tiles are 16-aligned for the bf16 (16, 128) store tile.
# --------------------------------------------------------------------------
def _ln_kernel(x_ref, g_ref, b_ref, o_ref, *, eps):
    x = x_ref[...].astype(jnp.float32)
    mu = jnp.mean(x, axis=-1, keepdims=True)
    xc = x - mu
    var = jnp.mean(xc * xc, axis=-1, keepdims=True)
    y = xc * lax.rsqrt(var + eps)
    o_ref[...] = (y * g_ref[...] + b_ref[...]).astype(o_ref.dtype)


def layernorm(x, gamma, beta, eps, out_dtype=jnp.bfloat16):
    vmem_limit, tm_t, _, _ = _tpu_config()
    M, D = x.shape
    tm, Mp = _row_tiling(M, tm_t, 16)
    xp = _pad_rows(x, Mp)
    out = pl.pallas_call(
        functools.partial(_ln_kernel, eps=eps),
        out_shape=jax.ShapeDtypeStruct((Mp, D), out_dtype),
        grid=(Mp // tm,),
        in_specs=[
            pl.BlockSpec((tm, D), lambda i: (i, 0)),
            pl.BlockSpec((1, D), lambda i: (0, 0)),
            pl.BlockSpec((1, D), lambda i: (0, 0)),
        ],
        out_specs=pl.BlockSpec((tm, D), lambda i: (i, 0)),
        compiler_params=pltpu.CompilerParams(
            dimension_semantics=("parallel",),
            vmem_limit_bytes=vmem_limit),
    )(xp, gamma, beta)
    return out if Mp == M else out[:M]


# --------------------------------------------------------------------------
# Multi-head attention.  One grid step per batch element; the block keeps the
# original (B, S, D) layout (full model dim on the lane axis).  The per-head
# split uses static slices, each head's context is accumulated into an (S, D)
# f32 VMEM scratch, and the output block is written with ONE lane-dense
# (S, D) store (no per-head sub-128-lane masked stores to the output).
# --------------------------------------------------------------------------
def _attn_kernel(qkv_ref, m_ref, o_ref, ctx_ref, *, num_heads, head_dim, dim,
                 scale):
    neg = m_ref[0].astype(jnp.float32) * jnp.float32(-1e9)      # (1, S)
    for h in range(num_heads):                                   # static unroll
        lo = h * head_dim
        hi = lo + head_dim
        q = qkv_ref[0, :, lo:hi]                                  # (S, Dh) bf16
        k = qkv_ref[0, :, dim + lo:dim + hi]                      # (S, Dh) bf16
        v = qkv_ref[0, :, 2 * dim + lo:2 * dim + hi]              # (S, Dh) bf16
        # Fold 1/sqrt(Dh) into q (S*Dh mults) instead of scaling (S,S) scores.
        qs = (q.astype(jnp.float32) * jnp.float32(scale)).astype(q.dtype)
        # q @ k^T via dot_general (contract last dims), f32 accumulation.
        s = lax.dot_general(qs, k, (((1,), (1,)), ((), ())),
                            preferred_element_type=jnp.float32)   # (S, S)
        s = s + neg                                               # mask in f32
        s_max = jnp.max(s, axis=-1, keepdims=True)
        p = jnp.exp(s - s_max)
        denom = jnp.sum(p, axis=-1, keepdims=True)
        denom = jnp.maximum(denom, jnp.float32(1e-30))            # all-masked-row guard
        p = p * pl.reciprocal(denom, approx=True)                 # EUP, not VPU
        ctx_ref[:, lo:hi] = jnp.dot(p.astype(v.dtype), v,
                                    preferred_element_type=jnp.float32)
    o_ref[0] = ctx_ref[...].astype(o_ref.dtype)                   # lane-dense store


def mha_attention(qkv, pad_mask, num_heads, scale, out_dtype=jnp.bfloat16):
    """qkv: (B, S, 3D) fused Q|K|V (bf16).  pad_mask: (B, 1, S), 1.0 at pads.
    Returns context (B, S, D) with heads re-merged on the lane axis."""
    B, S, three_d = qkv.shape
    D = three_d // 3
    Dh = D // num_heads
    vmem_limit, _, _, _ = _tpu_config()
    return pl.pallas_call(
        functools.partial(_attn_kernel, num_heads=num_heads, head_dim=Dh,
                          dim=D, scale=scale),
        out_shape=jax.ShapeDtypeStruct((B, S, D), out_dtype),
        grid=(B,),
        in_specs=[
            pl.BlockSpec((1, S, three_d), lambda b: (b, 0, 0)),
            pl.BlockSpec((1, 1, S), lambda b: (b, 0, 0)),
        ],
        out_specs=pl.BlockSpec((1, S, D), lambda b: (b, 0, 0)),
        scratch_shapes=[pltpu.VMEM((S, D), jnp.float32)],
        compiler_params=pltpu.CompilerParams(
            dimension_semantics=("parallel",),
            vmem_limit_bytes=vmem_limit),
    )(qkv, pad_mask)
    # TODO(synk): for long sequences / many heads, move heads onto the grid
    # with 128-lane-aligned head slabs and flash-style (online-softmax) KV
    # tiling so full (S,S) score panels never materialize (needed for S>=1024
    # under v7x's 64 MiB VMEM).


# --------------------------------------------------------------------------
# Parameter init (deterministic, synthetic).  Matmul weights stored in bf16,
# biases / LayerNorm params / embeddings / head in f32.
# --------------------------------------------------------------------------
def init_params(key, cfg):
    t = cfg["transformer"]
    D, dff, L = t["dim_model"], t["dim_ff"], t["num_layers"]
    V, P = t["vocab_size"], t["max_position_encoding"]
    C = cfg["data"]["num_classes"]

    def nrm(k, shape, dtype=jnp.float32):
        return (jax.random.normal(k, shape, jnp.float32) * 0.02).astype(dtype)

    keys = jax.random.split(key, 8 + L)
    params = {
        "word_emb": nrm(keys[0], (V, D)),
        "pos_emb": nrm(keys[1], (P, D)),
        "type_emb": nrm(keys[2], (2, D)),
        "emb_ln_g": jnp.ones((1, D), jnp.float32),
        "emb_ln_b": jnp.zeros((1, D), jnp.float32),
        "wp": nrm(keys[3], (D, D)), "bp": jnp.zeros((1, D), jnp.float32),
        "wc": nrm(keys[4], (D, C)), "bc": jnp.zeros((1, C), jnp.float32),
        "layers": [],
    }
    for li in range(L):
        lk = jax.random.split(keys[8 + li], 4)
        params["layers"].append({
            # fused Q|K|V projection
            "wqkv": nrm(lk[0], (D, 3 * D), jnp.bfloat16),
            "bqkv": jnp.zeros((1, 3 * D), jnp.float32),
            "wo": nrm(lk[1], (D, D), jnp.bfloat16),
            "bo": jnp.zeros((1, D), jnp.float32),
            "ln1_g": jnp.ones((1, D), jnp.float32),
            "ln1_b": jnp.zeros((1, D), jnp.float32),
            "w1": nrm(lk[2], (D, dff), jnp.bfloat16),
            "b1": jnp.zeros((1, dff), jnp.float32),
            "w2": nrm(lk[3], (dff, D), jnp.bfloat16),
            "b2": jnp.zeros((1, D), jnp.float32),
            "ln2_g": jnp.ones((1, D), jnp.float32),
            "ln2_b": jnp.zeros((1, D), jnp.float32),
        })
    return params


# --------------------------------------------------------------------------
# BertClassifier forward
# --------------------------------------------------------------------------
def bert_classifier_forward(params, input_ids, token_type_ids, cfg):
    t = cfg["transformer"]
    D, H = t["dim_model"], t["num_heads"]
    Dh = D // H
    eps = float(t["layer_norm_eps"])
    B, S = input_ids.shape
    M = B * S

    # create_padding_mask: 1.0 where token id == 0
    pad_mask = (input_ids == 0).astype(jnp.float32).reshape(B, 1, S)

    # --- BertEmbeddings: gathers + adds are XLA glue, LN is a tiled kernel ---
    word = jnp.take(params["word_emb"], input_ids, axis=0)            # (B,S,D)
    pos = jnp.take(params["pos_emb"],
                   jnp.arange(S, dtype=jnp.int32), axis=0)[None]      # (1,S,D)
    typ = jnp.take(params["type_emb"], token_type_ids, axis=0)        # (B,S,D)
    # cast to bf16 before the memory-bound LN kernel (halves HBM reads);
    # mean/var math stays f32 inside the kernel.
    emb = (word + pos + typ).reshape(M, D).astype(jnp.bfloat16)
    h = layernorm(emb, params["emb_ln_g"], params["emb_ln_b"], eps)   # bf16
    # dropout(p=0.1): identity at inference

    scale = 1.0 / math.sqrt(Dh)

    # --- TransformerEncoder (post-LN BERT layer, ReLU FFN assumed) ---
    for lp in params["layers"]:
        # fused QKV projection: one matmul, h read from HBM once
        qkv = dense(h, lp["wqkv"], lp["bqkv"])                        # (M, 3D)
        ctx = mha_attention(qkv.reshape(B, S, 3 * D), pad_mask, H, scale)
        # attention output projection with fused residual-add + LayerNorm
        h = dense_add_layernorm(ctx.reshape(M, D), lp["wo"], lp["bo"],
                                h, lp["ln1_g"], lp["ln1_b"], eps)
        # FFN: matmul+ReLU, then matmul with fused residual-add + LayerNorm
        ff = dense(h, lp["w1"], lp["b1"], activation="relu")          # (M,dff)
        h = dense_add_layernorm(ff, lp["w2"], lp["b2"],
                                h, lp["ln2_g"], lp["ln2_b"], eps)

    # --- BertPooler + classifier head: tiny (B,D)/(B,C) matmuls -> plain XLA
    cls = h.reshape(B, S, D)[:, 0, :].astype(jnp.float32)             # (B, D)
    pooled = jnp.tanh(cls @ params["wp"] + params["bp"])
    # dropout(p=0.1): identity at inference
    logits = pooled @ params["wc"] + params["bc"]                     # (B, C)
    return logits


# --------------------------------------------------------------------------
if __name__ == "__main__":
    config = {
        "transformer": {
            "vocab_size": 100,
            "dim_model": 32,
            "num_heads": 4,
            "dim_ff": 64,
            "num_layers": 2,
            "max_position_encoding": 16,
            "layer_norm_eps": 1e-12,
        },
        "data": {"num_classes": 3},
    }

    B, S = 2, 8
    key = jax.random.PRNGKey(0)
    k_param, k_ids = jax.random.split(key)

    params = init_params(k_param, config)

    input_ids = jax.random.randint(
        k_ids, (B, S), 1, config["transformer"]["vocab_size"], dtype=jnp.int32)
    input_ids = input_ids.at[1, 6:].set(0)          # padding tokens in batch 1
    token_type_ids = jnp.zeros((B, S), jnp.int32).at[:, S // 2:].set(1)

    fwd = jax.jit(functools.partial(bert_classifier_forward, cfg=config))
    logits = jax.block_until_ready(fwd(params, input_ids, token_type_ids))
    assert logits.shape == (B, config["data"]["num_classes"])
    assert bool(jnp.all(jnp.isfinite(logits)))
    print("KERNEL_OK")
</pallas_src>

<mosaic_0001>
module attributes {stable_mosaic.version = 11 : i64} {
  func.func @_ln_kernel(%arg0: i32, %arg1: memref<16x32xbf16, #tpu.memory_space<vmem>>, %arg2: memref<1x32xf32, #tpu.memory_space<vmem>>, %arg3: memref<1x32xf32, #tpu.memory_space<vmem>>, %arg4: memref<16x32xbf16, #tpu.memory_space<vmem>>) attributes {dimension_semantics = [#tpu.dimension_semantics<parallel>], iteration_bounds = array<i64: 1>, scalar_prefetch = 0 : i64, scratch_operands = 0 : i64, tpu.core_type = #tpu.core_type<tc>, window_params = [{transform_indices = @transform_0, window_bounds = array<i64: 16, 32>}, {pipeline_mode = #tpu.pipeline_mode<synchronous>, transform_indices = @transform_1, window_bounds = array<i64: 1, 32>}, {pipeline_mode = #tpu.pipeline_mode<synchronous>, transform_indices = @transform_2, window_bounds = array<i64: 1, 32>}, {transform_indices = @transform_3, window_bounds = array<i64: 16, 32>}]} {
    %c0 = arith.constant 0 : index
    %c0_0 = arith.constant 0 : index
    %0 = vector.load %arg1[%c0, %c0_0] : memref<16x32xbf16, #tpu.memory_space<vmem>>, vector<16x32xbf16>
    %1 = arith.extf %0 : vector<16x32xbf16> to vector<16x32xf32>
    %cst = arith.constant dense<0.000000e+00> : vector<16xf32>
    %2 = vector.multi_reduction <add>, %1, %cst [1] : vector<16x32xf32> to vector<16xf32>
    %3 = vector.shape_cast %2 : vector<16xf32> to vector<16x1xf32>
    %cst_1 = arith.constant 3.200000e+01 : f32
    %4 = vector.broadcast %cst_1 : f32 to vector<16x1xf32>
    %5 = arith.divf %3, %4 : vector<16x1xf32>
    %6 = vector.broadcast %5 : vector<16x1xf32> to vector<16x32xf32>
    %7 = arith.subf %1, %6 : vector<16x32xf32>
    %8 = arith.mulf %7, %7 : vector<16x32xf32>
    %cst_2 = arith.constant dense<0.000000e+00> : vector<16xf32>
    %9 = vector.multi_reduction <add>, %8, %cst_2 [1] : vector<16x32xf32> to vector<16xf32>
    %10 = vector.shape_cast %9 : vector<16xf32> to vector<16x1xf32>
    %cst_3 = arith.constant 3.200000e+01 : f32
    %11 = vector.broadcast %cst_3 : f32 to vector<16x1xf32>
    %12 = arith.divf %10, %11 : vector<16x1xf32>
    %cst_4 = arith.constant 9.99999996E-13 : f32
    %13 = vector.broadcast %cst_4 : f32 to vector<16x1xf32>
    %14 = arith.addf %12, %13 : vector<16x1xf32>
    %15 = math.rsqrt %14 : vector<16x1xf32>
    %16 = vector.broadcast %15 : vector<16x1xf32> to vector<16x32xf32>
    %17 = arith.mulf %7, %16 : vector<16x32xf32>
    %c0_5 = arith.constant 0 : index
    %c0_6 = arith.constant 0 : index
    %18 = vector.load %arg2[%c0_5, %c0_6] : memref<1x32xf32, #tpu.memory_space<vmem>>, vector<1x32xf32>
    %19 = vector.broadcast %18 : vector<1x32xf32> to vector<16x32xf32>
    %20 = arith.mulf %17, %19 : vector<16x32xf32>
    %c0_7 = arith.constant 0 : index
    %c0_8 = arith.constant 0 : index
    %21 = vector.load %arg3[%c0_7, %c0_8] : memref<1x32xf32, #tpu.memory_space<vmem>>, vector<1x32xf32>
    %22 = vector.broadcast %21 : vector<1x32xf32> to vector<16x32xf32>
    %23 = arith.addf %20, %22 : vector<16x32xf32>
    %24 = arith.truncf %23 : vector<16x32xf32> to vector<16x32xbf16>
    %c0_9 = arith.constant 0 : index
    %c0_10 = arith.constant 0 : index
    %25 = vector.load %arg4[%c0_9, %c0_10] : memref<16x32xbf16, #tpu.memory_space<vmem>>, vector<16x32xbf16>
    tpu.vector_store %arg4[%c0_9, %c0_10], %24 {strides = array<i32>} : memref<16x32xbf16, #tpu.memory_space<vmem>>, vector<16x32xbf16>,
    return
  }
  func.func @transform_0(%arg0: i32) -> (i32, i32) {
    %c0_i32 = arith.constant 0 : i32
    %c0_i32_0 = arith.constant 0 : i32
    return %arg0, %c0_i32 : i32, i32
  }
  func.func @transform_1(%arg0: i32) -> (i32, i32) {
    %c0_i32 = arith.constant 0 : i32
    %c0_i32_0 = arith.constant 0 : i32
    %c0_i32_1 = arith.constant 0 : i32
    return %c0_i32, %c0_i32_0 : i32, i32
  }
  func.func @transform_2(%arg0: i32) -> (i32, i32) {
    %c0_i32 = arith.constant 0 : i32
    %c0_i32_0 = arith.constant 0 : i32
    %c0_i32_1 = arith.constant 0 : i32
    return %c0_i32, %c0_i32_0 : i32, i32
  }
  func.func @transform_3(%arg0: i32) -> (i32, i32) {
    %c0_i32 = arith.constant 0 : i32
    %c0_i32_0 = arith.constant 0 : i32
    return %arg0, %c0_i32 : i32, i32
  }
}

module attributes {stable_mosaic.version = 11 : i64} {
  func.func @_dense_kernel(%arg0: i32, %arg1: i32, %arg2: i32, %arg3: memref<16x32xbf16, #tpu.memory_space<vmem>>, %arg4: memref<32x96xbf16, #tpu.memory_space<vmem>>, %arg5: memref<1x96xf32, #tpu.memory_space<vmem>>, %arg6: memref<16x96xbf16, #tpu.memory_space<vmem>>, %arg7: memref<16x96xf32, #tpu.memory_space<vmem>>) attributes {dimension_semantics = [#tpu.dimension_semantics<parallel>, #tpu.dimension_semantics<parallel>, #tpu.dimension_semantics<arbitrary>], iteration_bounds = array<i64: 1, 1, 1>, scalar_prefetch = 0 : i64, scratch_operands = 1 : i64, tpu.core_type = #tpu.core_type<tc>, window_params = [{transform_indices = @transform_0, window_bounds = array<i64: 16, 32>}, {transform_indices = @transform_1, window_bounds = array<i64: 32, 96>}, {transform_indices = @transform_2, window_bounds = array<i64: 1, 96>}, {transform_indices = @transform_3, window_bounds = array<i64: 16, 96>}]} {
    %c0_i32 = arith.constant 0 : i32
    %0 = arith.cmpi eq, %arg2, %c0_i32 : i32
    %1 = arith.extui %0 : i1 to i32
    %c0_i32_0 = arith.constant 0 : i32
    %2 = arith.cmpi ne, %1, %c0_i32_0 : i32
    scf.if %2 {
      %cst_10 = arith.constant 0.000000e+00 : f32
      %12 = vector.broadcast %cst_10 : f32 to vector<16x96xf32>
      %c0_11 = arith.constant 0 : index
      %c0_12 = arith.constant 0 : index
      %13 = vector.load %arg7[%c0_11, %c0_12] : memref<16x96xf32, #tpu.memory_space<vmem>>, vector<16x96xf32>
      tpu.vector_store %arg7[%c0_11, %c0_12], %12 {strides = array<i32>} : memref<16x96xf32, #tpu.memory_space<vmem>>, vector<16x96xf32>,
    } else {
    }
    %c0 = arith.constant 0 : index
    %c0_1 = arith.constant 0 : index
    %3 = vector.load %arg7[%c0, %c0_1] : memref<16x96xf32, #tpu.memory_space<vmem>>, vector<16x96xf32>
    %c0_2 = arith.constant 0 : index
    %c0_3 = arith.constant 0 : index
    %4 = vector.load %arg3[%c0_2, %c0_3] : memref<16x32xbf16, #tpu.memory_space<vmem>>, vector<16x32xbf16>
    %c0_4 = arith.constant 0 : index
    %c0_5 = arith.constant 0 : index
    %5 = vector.load %arg4[%c0_4, %c0_5] : memref<32x96xbf16, #tpu.memory_space<vmem>>, vector<32x96xbf16>
    %cst = arith.constant dense<0.000000e+00> : vector<16x96xf32>
    %6 = tpu.matmul %4, %5, %cst {dimension_numbers = #tpu.dot_dimension_numbers<[1], [0], [0], [1], [0, 0, 1, 1], [], []>} : vector<16x32xbf16>, vector<32x96xbf16>, vector<16x96xf32> -> vector<16x96xf32>
    %7 = arith.addf %3, %6 : vector<16x96xf32>
    %c0_6 = arith.constant 0 : index
    %c0_7 = arith.constant 0 : index
    %8 = vector.load %arg7[%c0_6, %c0_7] : memref<16x96xf32, #tpu.memory_space<vmem>>, vector<16x96xf32>
    tpu.vector_store %arg7[%c0_6, %c0_7], %7 {strides = array<i32>} : memref<16x96xf32, #tpu.memory_space<vmem>>, vector<16x96xf32>,
    %c0_i32_8 = arith.constant 0 : i32
    %9 = arith.cmpi eq, %arg2, %c0_i32_8 : i32
    %10 = arith.extui %9 : i1 to i32
    %c0_i32_9 = arith.constant 0 : i32
    %11 = arith.cmpi ne, %10, %c0_i32_9 : i32
    scf.if %11 {
      %c0_10 = arith.constant 0 : index
      %c0_11 = arith.constant 0 : index
      %12 = vector.load %arg7[%c0_10, %c0_11] : memref<16x96xf32, #tpu.memory_space<vmem>>, vector<16x96xf32>
      %c0_12 = arith.constant 0 : index
      %c0_13 = arith.constant 0 : index
      %13 = vector.load %arg5[%c0_12, %c0_13] : memref<1x96xf32, #tpu.memory_space<vmem>>, vector<1x96xf32>
      %14 = vector.broadcast %13 : vector<1x96xf32> to vector<16x96xf32>
      %15 = arith.addf %12, %14 : vector<16x96xf32>
      %16 = arith.truncf %15 : vector<16x96xf32> to vector<16x96xbf16>
      %c0_14 = arith.constant 0 : index
      %c0_15 = arith.constant 0 : index
      %17 = vector.load %arg6[%c0_14, %c0_15] : memref<16x96xbf16, #tpu.memory_space<vmem>>, vector<16x96xbf16>
      tpu.vector_store %arg6[%c0_14, %c0_15], %16 {strides = array<i32>} : memref<16x96xbf16, #tpu.memory_space<vmem>>, vector<16x96xbf16>,
    } else {
    }
    return
  }
  func.func @transform_0(%arg0: i32, %arg1: i32, %arg2: i32) -> (i32, i32) {
    %c0_i32 = arith.constant 0 : i32
    return %arg0, %arg2 : i32, i32
  }
  func.func @transform_1(%arg0: i32, %arg1: i32, %arg2: i32) -> (i32, i32) {
    %c0_i32 = arith.constant 0 : i32
    return %arg2, %arg1 : i32, i32
  }
  func.func @transform_2(%arg0: i32, %arg1: i32, %arg2: i32) -> (i32, i32) {
    %c0_i32 = arith.constant 0 : i32
    %c0_i32_0 = arith.constant 0 : i32
    return %c0_i32, %arg1 : i32, i32
  }
  func.func @transform_3(%arg0: i32, %arg1: i32, %arg2: i32) -> (i32, i32) {
    %c0_i32 = arith.constant 0 : i32
    return %arg0, %arg1 : i32, i32
  }
}

module attributes {stable_mosaic.version = 11 : i64} {
  func.func @_dense_ln_kernel(%arg0: i32, %arg1: i32, %arg2: memref<16x32xbf16, #tpu.memory_space<vmem>>, %arg3: memref<32x32xbf16, #tpu.memory_space<vmem>>, %arg4: memref<1x32xf32, #tpu.memory_space<vmem>>, %arg5: memref<16x32xbf16, #tpu.memory_space<vmem>>, %arg6: memref<1x32xf32, #tpu.memory_space<vmem>>, %arg7: memref<1x32xf32, #tpu.memory_space<vmem>>, %arg8: memref<16x32xbf16, #tpu.memory_space<vmem>>, %arg9: memref<16x32xf32, #tpu.memory_space<vmem>>) attributes {dimension_semantics = [#tpu.dimension_semantics<parallel>, #tpu.dimension_semantics<arbitrary>], iteration_bounds = array<i64: 1, 1>, scalar_prefetch = 0 : i64, scratch_operands = 1 : i64, tpu.core_type = #tpu.core_type<tc>, window_params = [{transform_indices = @transform_0, window_bounds = array<i64: 16, 32>}, {transform_indices = @transform_1, window_bounds = array<i64: 32, 32>}, {pipeline_mode = #tpu.pipeline_mode<synchronous>, transform_indices = @transform_2, window_bounds = array<i64: 1, 32>}, {transform_indices = @transform_3, window_bounds = array<i64: 16, 32>}, {pipeline_mode = #tpu.pipeline_mode<synchronous>, transform_indices = @transform_4, window_bounds = array<i64: 1, 32>}, {pipeline_mode = #tpu.pipeline_mode<synchronous>, transform_indices = @transform_5, window_bounds = array<i64: 1, 32>}, {transform_indices = @transform_6, window_bounds = array<i64: 16, 32>}]} {
    %c0_i32 = arith.constant 0 : i32
    %0 = arith.cmpi eq, %arg1, %c0_i32 : i32
    %1 = arith.extui %0 : i1 to i32
    %c0_i32_0 = arith.constant 0 : i32
    %2 = arith.cmpi ne, %1, %c0_i32_0 : i32
    scf.if %2 {
      %cst_10 = arith.constant 0.000000e+00 : f32
      %12 = vector.broadcast %cst_10 : f32 to vector<16x32xf32>
      %c0_11 = arith.constant 0 : index
      %c0_12 = arith.constant 0 : index
      %13 = vector.load %arg9[%c0_11, %c0_12] : memref<16x32xf32, #tpu.memory_space<vmem>>, vector<16x32xf32>
      tpu.vector_store %arg9[%c0_11, %c0_12], %12 {strides = array<i32>} : memref<16x32xf32, #tpu.memory_space<vmem>>, vector<16x32xf32>,
    } else {
    }
    %c0 = arith.constant 0 : index
    %c0_1 = arith.constant 0 : index
    %3 = vector.load %arg9[%c0, %c0_1] : memref<16x32xf32, #tpu.memory_space<vmem>>, vector<16x32xf32>
    %c0_2 = arith.constant 0 : index
    %c0_3 = arith.constant 0 : index
    %4 = vector.load %arg2[%c0_2, %c0_3] : memref<16x32xbf16, #tpu.memory_space<vmem>>, vector<16x32xbf16>
    %c0_4 = arith.constant 0 : index
    %c0_5 = arith.constant 0 : index
    %5 = vector.load %arg3[%c0_4, %c0_5] : memref<32x32xbf16, #tpu.memory_space<vmem>>, vector<32x32xbf16>
    %cst = arith.constant dense<0.000000e+00> : vector<16x32xf32>
    %6 = tpu.matmul %4, %5, %cst {dimension_numbers = #tpu.dot_dimension_numbers<[1], [0], [0], [1], [0, 0, 1, 1], [], []>} : vector<16x32xbf16>, vector<32x32xbf16>, vector<16x32xf32> -> vector<16x32xf32>
    %7 = arith.addf %3, %6 : vector<16x32xf32>
    %c0_6 = arith.constant 0 : index
    %c0_7 = arith.constant 0 : index
    %8 = vector.load %arg9[%c0_6, %c0_7] : memref<16x32xf32, #tpu.memory_space<vmem>>, vector<16x32xf32>
    tpu.vector_store %arg9[%c0_6, %c0_7], %7 {strides = array<i32>} : memref<16x32xf32, #tpu.memory_space<vmem>>, vector<16x32xf32>,
    %c0_i32_8 = arith.constant 0 : i32
    %9 = arith.cmpi eq, %arg1, %c0_i32_8 : i32
    %10 = arith.extui %9 : i1 to i32
    %c0_i32_9 = arith.constant 0 : i32
    %11 = arith.cmpi ne, %10, %c0_i32_9 : i32
    scf.if %11 {
      %c0_10 = arith.constant 0 : index
      %c0_11 = arith.constant 0 : index
      %12 = vector.load %arg9[%c0_10, %c0_11] : memref<16x32xf32, #tpu.memory_space<vmem>>, vector<16x32xf32>
      %c0_12 = arith.constant 0 : index
      %c0_13 = arith.constant 0 : index
      %13 = vector.load %arg4[%c0_12, %c0_13] : memref<1x32xf32, #tpu.memory_space<vmem>>, vector<1x32xf32>
      %14 = vector.broadcast %13 : vector<1x32xf32> to vector<16x32xf32>
      %15 = arith.addf %12, %14 : vector<16x32xf32>
      %c0_14 = arith.constant 0 : index
      %c0_15 = arith.constant 0 : index
      %16 = vector.load %arg5[%c0_14, %c0_15] : memref<16x32xbf16, #tpu.memory_space<vmem>>, vector<16x32xbf16>
      %17 = arith.extf %16 : vector<16x32xbf16> to vector<16x32xf32>
      %18 = arith.addf %15, %17 : vector<16x32xf32>
      %cst_16 = arith.constant dense<0.000000e+00> : vector<16xf32>
      %19 = vector.multi_reduction <add>, %18, %cst_16 [1] : vector<16x32xf32> to vector<16xf32>
      %20 = vector.shape_cast %19 : vector<16xf32> to vector<16x1xf32>
      %cst_17 = arith.constant 3.200000e+01 : f32
      %21 = vector.broadcast %cst_17 : f32 to vector<16x1xf32>
      %22 = arith.divf %20, %21 : vector<16x1xf32>
      %23 = vector.broadcast %22 : vector<16x1xf32> to vector<16x32xf32>
      %24 = arith.subf %18, %23 : vector<16x32xf32>
      %25 = arith.mulf %24, %24 : vector<16x32xf32>
      %cst_18 = arith.constant dense<0.000000e+00> : vector<16xf32>
      %26 = vector.multi_reduction <add>, %25, %cst_18 [1] : vector<16x32xf32> to vector<16xf32>
      %27 = vector.shape_cast %26 : vector<16xf32> to vector<16x1xf32>
      %cst_19 = arith.constant 3.200000e+01 : f32
      %28 = vector.broadcast %cst_19 : f32 to vector<16x1xf32>
      %29 = arith.divf %27, %28 : vector<16x1xf32>
      %cst_20 = arith.constant 9.99999996E-13 : f32
      %30 = vector.broadcast %cst_20 : f32 to vector<16x1xf32>
      %31 = arith.addf %29, %30 : vector<16x1xf32>
      %32 = math.rsqrt %31 : vector<16x1xf32>
      %33 = vector.broadcast %32 : vector<16x1xf32> to vector<16x32xf32>
      %34 = arith.mulf %24, %33 : vector<16x32xf32>
      %c0_21 = arith.constant 0 : index
      %c0_22 = arith.constant 0 : index
      %35 = vector.load %arg6[%c0_21, %c0_22] : memref<1x32xf32, #tpu.memory_space<vmem>>, vector<1x32xf32>
      %36 = vector.broadcast %35 : vector<1x32xf32> to vector<16x32xf32>
      %37 = arith.mulf %34, %36 : vector<16x32xf32>
      %c0_23 = arith.constant 0 : index
      %c0_24 = arith.constant 0 : index
      %38 = vector.load %arg7[%c0_23, %c0_24] : memref<1x32xf32, #tpu.memory_space<vmem>>, vector<1x32xf32>
      %39 = vector.broadcast %38 : vector<1x32xf32> to vector<16x32xf32>
      %40 = arith.addf %37, %39 : vector<16x32xf32>
      %41 = arith.truncf %40 : vector<16x32xf32> to vector<16x32xbf16>
      %c0_25 = arith.constant 0 : index
      %c0_26 = arith.constant 0 : index
      %42 = vector.load %arg8[%c0_25, %c0_26] : memref<16x32xbf16, #tpu.memory_space<vmem>>, vector<16x32xbf16>
      tpu.vector_store %arg8[%c0_25, %c0_26], %41 {strides = array<i32>} : memref<16x32xbf16, #tpu.memory_space<vmem>>, vector<16x32xbf16>,
    } else {
    }
    return
  }
  func.func @transform_0(%arg0: i32, %arg1: i32) -> (i32, i32) {
    %c0_i32 = arith.constant 0 : i32
    return %arg0, %arg1 : i32, i32
  }
  func.func @transform_1(%arg0: i32, %arg1: i32) -> (i32, i32) {
    %c0_i32 = arith.constant 0 : i32
    %c0_i32_0 = arith.constant 0 : i32
    return %arg1, %c0_i32 : i32, i32
  }
  func.func @transform_2(%arg0: i32, %arg1: i32) -> (i32, i32) {
    %c0_i32 = arith.constant 0 : i32
    %c0_i32_0 = arith.constant 0 : i32
    %c0_i32_1 = arith.constant 0 : i32
    return %c0_i32, %c0_i32_0 : i32, i32
  }
  func.func @transform_3(%arg0: i32, %arg1: i32) -> (i32, i32) {
    %c0_i32 = arith.constant 0 : i32
    %c0_i32_0 = arith.constant 0 : i32
    return %arg0, %c0_i32 : i32, i32
  }
  func.func @transform_4(%arg0: i32, %arg1: i32) -> (i32, i32) {
    %c0_i32 = arith.constant 0 : i32
    %c0_i32_0 = arith.constant 0 : i32
    %c0_i32_1 = arith.constant 0 : i32
    return %c0_i32, %c0_i32_0 : i32, i32
  }
  func.func @transform_5(%arg0: i32, %arg1: i32) -> (i32, i32) {
    %c0_i32 = arith.constant 0 : i32
    %c0_i32_0 = arith.constant 0 : i32
    %c0_i32_1 = arith.constant 0 : i32
    return %c0_i32, %c0_i32_0 : i32, i32
  }
  func.func @transform_6(%arg0: i32, %arg1: i32) -> (i32, i32) {
    %c0_i32 = arith.constant 0 : i32
    %c0_i32_0 = arith.constant 0 : i32
    return %arg0, %c0_i32 : i32, i32
  }
}

module attributes {stable_mosaic.version = 11 : i64} {
  func.func @_attn_kernel(%arg0: i32, %arg1: memref<1x8x96xbf16, #tpu.memory_space<vmem>>, %arg2: memref<1x1x8xf32, #tpu.memory_space<vmem>>, %arg3: memref<1x8x32xbf16, #tpu.memory_space<vmem>>, %arg4: memref<8x32xf32, #tpu.memory_space<vmem>>) attributes {dimension_semantics = [#tpu.dimension_semantics<parallel>], iteration_bounds = array<i64: 2>, scalar_prefetch = 0 : i64, scratch_operands = 1 : i64, tpu.core_type = #tpu.core_type<tc>, window_params = [{transform_indices = @transform_0, window_bounds = array<i64: 1, 8, 96>}, {transform_indices = @transform_1, window_bounds = array<i64: 1, 1, 8>}, {transform_indices = @transform_2, window_bounds = array<i64: 1, 8, 32>}]} {
    %c0 = arith.constant 0 : index
    %c0_0 = arith.constant 0 : index
    %c0_1 = arith.constant 0 : index
    %0 = vector.load %arg2[%c0, %c0_0, %c0_1] : memref<1x1x8xf32, #tpu.memory_space<vmem>>, vector<1x1x8xf32>
    %1 = vector.shape_cast %0 : vector<1x1x8xf32> to vector<1x8xf32>
    %cst = arith.constant -1.000000e+09 : f32
    %2 = vector.broadcast %cst : f32 to vector<1x8xf32>
    %3 = arith.mulf %1, %2 : vector<1x8xf32>
    %c0_2 = arith.constant 0 : index
    %c0_3 = arith.constant 0 : index
    %c0_4 = arith.constant 0 : index
    %4 = vector.load %arg1[%c0_2, %c0_3, %c0_4] : memref<1x8x96xbf16, #tpu.memory_space<vmem>>, vector<1x8x8xbf16>
    %5 = vector.shape_cast %4 : vector<1x8x8xbf16> to vector<8x8xbf16>
    %c0_5 = arith.constant 0 : index
    %c0_6 = arith.constant 0 : index
    %c32 = arith.constant 32 : index
    %6 = vector.load %arg1[%c0_5, %c0_6, %c32] : memref<1x8x96xbf16, #tpu.memory_space<vmem>>, vector<1x8x8xbf16>
    %7 = vector.shape_cast %6 : vector<1x8x8xbf16> to vector<8x8xbf16>
    %c0_7 = arith.constant 0 : index
    %c0_8 = arith.constant 0 : index
    %c64 = arith.constant 64 : index
    %8 = vector.load %arg1[%c0_7, %c0_8, %c64] : memref<1x8x96xbf16, #tpu.memory_space<vmem>>, vector<1x8x8xbf16>
    %9 = vector.shape_cast %8 : vector<1x8x8xbf16> to vector<8x8xbf16>
    %10 = arith.extf %5 : vector<8x8xbf16> to vector<8x8xf32>
    %cst_9 = arith.constant 0.353553385 : f32
    %11 = vector.broadcast %cst_9 : f32 to vector<8x8xf32>
    %12 = arith.mulf %10, %11 : vector<8x8xf32>
    %13 = arith.truncf %12 : vector<8x8xf32> to vector<8x8xbf16>
    %cst_10 = arith.constant dense<0.000000e+00> : vector<8x8xf32>
    %14 = tpu.matmul %13, %7, %cst_10 {dimension_numbers = #tpu.dot_dimension_numbers<[1], [1], [0], [0], [0, 0, 1, 0], [], []>} : vector<8x8xbf16>, vector<8x8xbf16>, vector<8x8xf32> -> vector<8x8xf32>
    %15 = vector.broadcast %3 : vector<1x8xf32> to vector<8x8xf32>
    %16 = arith.addf %14, %15 : vector<8x8xf32>
    %cst_11 = arith.constant dense<0xFF800000> : vector<8xf32>
    %17 = vector.multi_reduction <maximumf>, %16, %cst_11 [1] : vector<8x8xf32> to vector<8xf32>
    %18 = vector.shape_cast %17 : vector<8xf32> to vector<8x1xf32>
    %19 = vector.broadcast %18 : vector<8x1xf32> to vector<8x8xf32>
    %20 = arith.subf %16, %19 : vector<8x8xf32>
    %21 = math.exp %20 : vector<8x8xf32>
    %cst_12 = arith.constant dense<0.000000e+00> : vector<8xf32>
    %22 = vector.multi_reduction <add>, %21, %cst_12 [1] : vector<8x8xf32> to vector<8xf32>
    %23 = vector.shape_cast %22 : vector<8xf32> to vector<8x1xf32>
    %cst_13 = arith.constant 1.000000e-30 : f32
    %24 = vector.broadcast %cst_13 : f32 to vector<8x1xf32>
    %25 = arith.maximumf %23, %24 : vector<8x1xf32>
    %26 = tpu.reciprocal %25 {approx = true} : vector<8x1xf32> -> vector<8x1xf32>
    %27 = vector.broadcast %26 : vector<8x1xf32> to vector<8x8xf32>
    %28 = arith.mulf %21, %27 : vector<8x8xf32>
    %29 = arith.truncf %28 : vector<8x8xf32> to vector<8x8xbf16>
    %cst_14 = arith.constant dense<0.000000e+00> : vector<8x8xf32>
    %30 = tpu.matmul %29, %9, %cst_14 {dimension_numbers = #tpu.dot_dimension_numbers<[1], [0], [0], [1], [0, 0, 1, 1], [], []>} : vector<8x8xbf16>, vector<8x8xbf16>, vector<8x8xf32> -> vector<8x8xf32>
    %c0_15 = arith.constant 0 : index
    %c0_16 = arith.constant 0 : index
    %31 = vector.load %arg4[%c0_15, %c0_16] : memref<8x32xf32, #tpu.memory_space<vmem>>, vector<8x8xf32>
    tpu.vector_store %arg4[%c0_15, %c0_16], %30 {strides = array<i32>} : memref<8x32xf32, #tpu.memory_space<vmem>>, vector<8x8xf32>,
    %c0_17 = arith.constant 0 : index
    %c0_18 = arith.constant 0 : index
    %c8 = arith.constant 8 : index
    %32 = vector.load %arg1[%c0_17, %c0_18, %c8] : memref<1x8x96xbf16, #tpu.memory_space<vmem>>, vector<1x8x8xbf16>
    %33 = vector.shape_cast %32 : vector<1x8x8xbf16> to vector<8x8xbf16>
    %c0_19 = arith.constant 0 : index
    %c0_20 = arith.constant 0 : index
    %c40 = arith.constant 40 : index
    %34 = vector.load %arg1[%c0_19, %c0_20, %c40] : memref<1x8x96xbf16, #tpu.memory_space<vmem>>, vector<1x8x8xbf16>
    %35 = vector.shape_cast %34 : vector<1x8x8xbf16> to vector<8x8xbf16>
    %c0_21 = arith.constant 0 : index
    %c0_22 = arith.constant 0 : index
    %c72 = arith.constant 72 : index
    %36 = vector.load %arg1[%c0_21, %c0_22, %c72] : memref<1x8x96xbf16, #tpu.memory_space<vmem>>, vector<1x8x8xbf16>
    %37 = vector.shape_cast %36 : vector<1x8x8xbf16> to vector<8x8xbf16>
    %38 = arith.extf %33 : vector<8x8xbf16> to vector<8x8xf32>
    %cst_23 = arith.constant 0.353553385 : f32
    %39 = vector.broadcast %cst_23 : f32 to vector<8x8xf32>
    %40 = arith.mulf %38, %39 : vector<8x8xf32>
    %41 = arith.truncf %40 : vector<8x8xf32> to vector<8x8xbf16>
    %cst_24 = arith.constant dense<0.000000e+00> : vector<8x8xf32>
    %42 = tpu.matmul %41, %35, %cst_24 {dimension_numbers = #tpu.dot_dimension_numbers<[1], [1], [0], [0], [0, 0, 1, 0], [], []>} : vector<8x8xbf16>, vector<8x8xbf16>, vector<8x8xf32> -> vector<8x8xf32>
    %43 = vector.broadcast %3 : vector<1x8xf32> to vector<8x8xf32>
    %44 = arith.addf %42, %43 : vector<8x8xf32>
    %cst_25 = arith.constant dense<0xFF800000> : vector<8xf32>
    %45 = vector.multi_reduction <maximumf>, %44, %cst_25 [1] : vector<8x8xf32> to vector<8xf32>
    %46 = vector.shape_cast %45 : vector<8xf32> to vector<8x1xf32>
    %47 = vector.broadcast %46 : vector<8x1xf32> to vector<8x8xf32>
    %48 = arith.subf %44, %47 : vector<8x8xf32>
    %49 = math.exp %48 : vector<8x8xf32>
    %cst_26 = arith.constant dense<0.000000e+00> : vector<8xf32>
    %50 = vector.multi_reduction <add>, %49, %cst_26 [1] : vector<8x8xf32> to vector<8xf32>
    %51 = vector.shape_cast %50 : vector<8xf32> to vector<8x1xf32>
    %cst_27 = arith.constant 1.000000e-30 : f32
    %52 = vector.broadcast %cst_27 : f32 to vector<8x1xf32>
    %53 = arith.maximumf %51, %52 : vector<8x1xf32>
    %54 = tpu.reciprocal %53 {approx = true} : vector<8x1xf32> -> vector<8x1xf32>
    %55 = vector.broadcast %54 : vector<8x1xf32> to vector<8x8xf32>
    %56 = arith.mulf %49, %55 : vector<8x8xf32>
    %57 = arith.truncf %56 : vector<8x8xf32> to vector<8x8xbf16>
    %cst_28 = arith.constant dense<0.000000e+00> : vector<8x8xf32>
    %58 = tpu.matmul %57, %37, %cst_28 {dimension_numbers = #tpu.dot_dimension_numbers<[1], [0], [0], [1], [0, 0, 1, 1], [], []>} : vector<8x8xbf16>, vector<8x8xbf16>, vector<8x8xf32> -> vector<8x8xf32>
    %c0_29 = arith.constant 0 : index
    %c8_30 = arith.constant 8 : index
    %59 = vector.load %arg4[%c0_29, %c8_30] : memref<8x32xf32, #tpu.memory_space<vmem>>, vector<8x8xf32>
    tpu.vector_store %arg4[%c0_29, %c8_30], %58 {strides = array<i32>} : memref<8x32xf32, #tpu.memory_space<vmem>>, vector<8x8xf32>,
    %c0_31 = arith.constant 0 : index
    %c0_32 = arith.constant 0 : index
    %c16 = arith.constant 16 : index
    %60 = vector.load %arg1[%c0_31, %c0_32, %c16] : memref<1x8x96xbf16, #tpu.memory_space<vmem>>, vector<1x8x8xbf16>
    %61 = vector.shape_cast %60 : vector<1x8x8xbf16> to vector<8x8xbf16>
    %c0_33 = arith.constant 0 : index
    %c0_34 = arith.constant 0 : index
    %c48 = arith.constant 48 : index
    %62 = vector.load %arg1[%c0_33, %c0_34, %c48] : memref<1x8x96xbf16, #tpu.memory_space<vmem>>, vector<1x8x8xbf16>
    %63 = vector.shape_cast %62 : vector<1x8x8xbf16> to vector<8x8xbf16>
    %c0_35 = arith.constant 0 : index
    %c0_36 = arith.constant 0 : index
    %c80 = arith.constant 80 : index
    %64 = vector.load %arg1[%c0_35, %c0_36, %c80] : memref<1x8x96xbf16, #tpu.memory_space<vmem>>, vector<1x8x8xbf16>
    %65 = vector.shape_cast %64 : vector<1x8x8xbf16> to vector<8x8xbf16>
    %66 = arith.extf %61 : vector<8x8xbf16> to vector<8x8xf32>
    %cst_37 = arith.constant 0.353553385 : f32
    %67 = vector.broadcast %cst_37 : f32 to vector<8x8xf32>
    %68 = arith.mulf %66, %67 : vector<8x8xf32>
    %69 = arith.truncf %68 : vector<8x8xf32> to vector<8x8xbf16>
    %cst_38 = arith.constant dense<0.000000e+00> : vector<8x8xf32>
    %70 = tpu.matmul %69, %63, %cst_38 {dimension_numbers = #tpu.dot_dimension_numbers<[1], [1], [0], [0], [0, 0, 1, 0], [], []>} : vector<8x8xbf16>, vector<8x8xbf16>, vector<8x8xf32> -> vector<8x8xf32>
    %71 = vector.broadcast %3 : vector<1x8xf32> to vector<8x8xf32>
    %72 = arith.addf %70, %71 : vector<8x8xf32>
    %cst_39 = arith.constant dense<0xFF800000> : vector<8xf32>
    %73 = vector.multi_reduction <maximumf>, %72, %cst_39 [1] : vector<8x8xf32> to vector<8xf32>
    %74 = vector.shape_cast %73 : vector<8xf32> to vector<8x1xf32>
    %75 = vector.broadcast %74 : vector<8x1xf32> to vector<8x8xf32>
    %76 = arith.subf %72, %75 : vector<8x8xf32>
    %77 = math.exp %76 : vector<8x8xf32>
    %cst_40 = arith.constant dense<0.000000e+00> : vector<8xf32>
    %78 = vector.multi_reduction <add>, %77, %cst_40 [1] : vector<8x8xf32> to vector<8xf32>
    %79 = vector.shape_cast %78 : vector<8xf32> to vector<8x1xf32>
    %cst_41 = arith.constant 1.000000e-30 : f32
    %80 = vector.broadcast %cst_41 : f32 to vector<8x1xf32>
    %81 = arith.maximumf %79, %80 : vector<8x1xf32>
    %82 = tpu.reciprocal %81 {approx = true} : vector<8x1xf32> -> vector<8x1xf32>
    %83 = vector.broadcast %82 : vector<8x1xf32> to vector<8x8xf32>
    %84 = arith.mulf %77, %83 : vector<8x8xf32>
    %85 = arith.truncf %84 : vector<8x8xf32> to vector<8x8xbf16>
    %cst_42 = arith.constant dense<0.000000e+00> : vector<8x8xf32>
    %86 = tpu.matmul %85, %65, %cst_42 {dimension_numbers = #tpu.dot_dimension_numbers<[1], [0], [0], [1], [0, 0, 1, 1], [], []>} : vector<8x8xbf16>, vector<8x8xbf16>, vector<8x8xf32> -> vector<8x8xf32>
    %c0_43 = arith.constant 0 : index
    %c16_44 = arith.constant 16 : index
    %87 = vector.load %arg4[%c0_43, %c16_44] : memref<8x32xf32, #tpu.memory_space<vmem>>, vector<8x8xf32>
    tpu.vector_store %arg4[%c0_43, %c16_44], %86 {strides = array<i32>} : memref<8x32xf32, #tpu.memory_space<vmem>>, vector<8x8xf32>,
    %c0_45 = arith.constant 0 : index
    %c0_46 = arith.constant 0 : index
    %c24 = arith.constant 24 : index
    %88 = vector.load %arg1[%c0_45, %c0_46, %c24] : memref<1x8x96xbf16, #tpu.memory_space<vmem>>, vector<1x8x8xbf16>
    %89 = vector.shape_cast %88 : vector<1x8x8xbf16> to vector<8x8xbf16>
    %c0_47 = arith.constant 0 : index
    %c0_48 = arith.constant 0 : index
    %c56 = arith.constant 56 : index
    %90 = vector.load %arg1[%c0_47, %c0_48, %c56] : memref<1x8x96xbf16, #tpu.memory_space<vmem>>, vector<1x8x8xbf16>
    %91 = vector.shape_cast %90 : vector<1x8x8xbf16> to vector<8x8xbf16>
    %c0_49 = arith.constant 0 : index
    %c0_50 = arith.constant 0 : index
    %c88 = arith.constant 88 : index
    %92 = vector.load %arg1[%c0_49, %c0_50, %c88] : memref<1x8x96xbf16, #tpu.memory_space<vmem>>, vector<1x8x8xbf16>
    %93 = vector.shape_cast %92 : vector<1x8x8xbf16> to vector<8x8xbf16>
    %94 = arith.extf %89 : vector<8x8xbf16> to vector<8x8xf32>
    %cst_51 = arith.constant 0.353553385 : f32
    %95 = vector.broadcast %cst_51 : f32 to vector<8x8xf32>
    %96 = arith.mulf %94, %95 : vector<8x8xf32>
    %97 = arith.truncf %96 : vector<8x8xf32> to vector<8x8xbf16>
    %cst_52 = arith.constant dense<0.000000e+00> : vector<8x8xf32>
    %98 = tpu.matmul %97, %91, %cst_52 {dimension_numbers = #tpu.dot_dimension_numbers<[1], [1], [0], [0], [0, 0, 1, 0], [], []>} : vector<8x8xbf16>, vector<8x8xbf16>, vector<8x8xf32> -> vector<8x8xf32>
    %99 = vector.broadcast %3 : vector<1x8xf32> to vector<8x8xf32>
    %100 = arith.addf %98, %99 : vector<8x8xf32>
    %cst_53 = arith.constant dense<0xFF800000> : vector<8xf32>
    %101 = vector.multi_reduction <maximumf>, %100, %cst_53 [1] : vector<8x8xf32> to vector<8xf32>
    %102 = vector.shape_cast %101 : vector<8xf32> to vector<8x1xf32>
    %103 = vector.broadcast %102 : vector<8x1xf32> to vector<8x8xf32>
    %104 = arith.subf %100, %103 : vector<8x8xf32>
    %105 = math.exp %104 : vector<8x8xf32>
    %cst_54 = arith.constant dense<0.000000e+00> : vector<8xf32>
    %106 = vector.multi_reduction <add>, %105, %cst_54 [1] : vector<8x8xf32> to vector<8xf32>
    %107 = vector.shape_cast %106 : vector<8xf32> to vector<8x1xf32>
    %cst_55 = arith.constant 1.000000e-30 : f32
    %108 = vector.broadcast %cst_55 : f32 to vector<8x1xf32>
    %109 = arith.maximumf %107, %108 : vector<8x1xf32>
    %110 = tpu.reciprocal %109 {approx = true} : vector<8x1xf32> -> vector<8x1xf32>
    %111 = vector.broadcast %110 : vector<8x1xf32> to vector<8x8xf32>
    %112 = arith.mulf %105, %111 : vector<8x8xf32>
    %113 = arith.truncf %112 : vector<8x8xf32> to vector<8x8xbf16>
    %cst_56 = arith.constant dense<0.000000e+00> : vector<8x8xf32>
    %114 = tpu.matmul %113, %93, %cst_56 {dimension_numbers = #tpu.dot_dimension_numbers<[1], [0], [0], [1], [0, 0, 1, 1], [], []>} : vector<8x8xbf16>, vector<8x8xbf16>, vector<8x8xf32> -> vector<8x8xf32>
    %c0_57 = arith.constant 0 : index
    %c24_58 = arith.constant 24 : index
    %115 = vector.load %arg4[%c0_57, %c24_58] : memref<8x32xf32, #tpu.memory_space<vmem>>, vector<8x8xf32>
    tpu.vector_store %arg4[%c0_57, %c24_58], %114 {strides = array<i32>} : memref<8x32xf32, #tpu.memory_space<vmem>>, vector<8x8xf32>,
    %c0_59 = arith.constant 0 : index
    %c0_60 = arith.constant 0 : index
    %116 = vector.load %arg4[%c0_59, %c0_60] : memref<8x32xf32, #tpu.memory_space<vmem>>, vector<8x32xf32>
    %117 = arith.truncf %116 : vector<8x32xf32> to vector<8x32xbf16>
    %c0_61 = arith.constant 0 : index
    %c0_62 = arith.constant 0 : index
    %c0_63 = arith.constant 0 : index
    %118 = vector.load %arg3[%c0_61, %c0_62, %c0_63] : memref<1x8x32xbf16, #tpu.memory_space<vmem>>, vector<1x8x32xbf16>
    %119 = vector.shape_cast %118 : vector<1x8x32xbf16> to vector<8x32xbf16>
    %120 = vector.shape_cast %117 : vector<8x32xbf16> to vector<1x8x32xbf16>
    tpu.vector_store %arg3[%c0_61, %c0_62, %c0_63], %120 {strides = array<i32>} : memref<1x8x32xbf16, #tpu.memory_space<vmem>>, vector<1x8x32xbf16>,
    return
  }
  func.func @transform_0(%arg0: i32) -> (i32, i32, i32) {
    %c0_i32 = arith.constant 0 : i32
    %c0_i32_0 = arith.constant 0 : i32
    %c0_i32_1 = arith.constant 0 : i32
    return %arg0, %c0_i32, %c0_i32_0 : i32, i32, i32
  }
  func.func @transform_1(%arg0: i32) -> (i32, i32, i32) {
    %c0_i32 = arith.constant 0 : i32
    %c0_i32_0 = arith.constant 0 : i32
    %c0_i32_1 = arith.constant 0 : i32
    return %arg0, %c0_i32, %c0_i32_0 : i32, i32, i32
  }
  func.func @transform_2(%arg0: i32) -> (i32, i32, i32) {
    %c0_i32 = arith.constant 0 : i32
    %c0_i32_0 = arith.constant 0 : i32
    %c0_i32_1 = arith.constant 0 : i32
    return %arg0, %c0_i32, %c0_i32_0 : i32, i32, i32
  }
}

module attributes {stable_mosaic.version = 11 : i64} {
  func.func @_dense_kernel(%arg0: i32, %arg1: i32, %arg2: i32, %arg3: memref<16x32xbf16, #tpu.memory_space<vmem>>, %arg4: memref<32x64xbf16, #tpu.memory_space<vmem>>, %arg5: memref<1x64xf32, #tpu.memory_space<vmem>>, %arg6: memref<16x64xbf16, #tpu.memory_space<vmem>>, %arg7: memref<16x64xf32, #tpu.memory_space<vmem>>) attributes {dimension_semantics = [#tpu.dimension_semantics<parallel>, #tpu.dimension_semantics<parallel>, #tpu.dimension_semantics<arbitrary>], iteration_bounds = array<i64: 1, 1, 1>, scalar_prefetch = 0 : i64, scratch_operands = 1 : i64, tpu.core_type = #tpu.core_type<tc>, window_params = [{transform_indices = @transform_0, window_bounds = array<i64: 16, 32>}, {transform_indices = @transform_1, window_bounds = array<i64: 32, 64>}, {transform_indices = @transform_2, window_bounds = array<i64: 1, 64>}, {transform_indices = @transform_3, window_bounds = array<i64: 16, 64>}]} {
    %c0_i32 = arith.constant 0 : i32
    %0 = arith.cmpi eq, %arg2, %c0_i32 : i32
    %1 = arith.extui %0 : i1 to i32
    %c0_i32_0 = arith.constant 0 : i32
    %2 = arith.cmpi ne, %1, %c0_i32_0 : i32
    scf.if %2 {
      %cst_10 = arith.constant 0.000000e+00 : f32
      %12 = vector.broadcast %cst_10 : f32 to vector<16x64xf32>
      %c0_11 = arith.constant 0 : index
      %c0_12 = arith.constant 0 : index
      %13 = vector.load %arg7[%c0_11, %c0_12] : memref<16x64xf32, #tpu.memory_space<vmem>>, vector<16x64xf32>
      tpu.vector_store %arg7[%c0_11, %c0_12], %12 {strides = array<i32>} : memref<16x64xf32, #tpu.memory_space<vmem>>, vector<16x64xf32>,
    } else {
    }
    %c0 = arith.constant 0 : index
    %c0_1 = arith.constant 0 : index
    %3 = vector.load %arg7[%c0, %c0_1] : memref<16x64xf32, #tpu.memory_space<vmem>>, vector<16x64xf32>
    %c0_2 = arith.constant 0 : index
    %c0_3 = arith.constant 0 : index
    %4 = vector.load %arg3[%c0_2, %c0_3] : memref<16x32xbf16, #tpu.memory_space<vmem>>, vector<16x32xbf16>
    %c0_4 = arith.constant 0 : index
    %c0_5 = arith.constant 0 : index
    %5 = vector.load %arg4[%c0_4, %c0_5] : memref<32x64xbf16, #tpu.memory_space<vmem>>, vector<32x64xbf16>
    %cst = arith.constant dense<0.000000e+00> : vector<16x64xf32>
    %6 = tpu.matmul %4, %5, %cst {dimension_numbers = #tpu.dot_dimension_numbers<[1], [0], [0], [1], [0, 0, 1, 1], [], []>} : vector<16x32xbf16>, vector<32x64xbf16>, vector<16x64xf32> -> vector<16x64xf32>
    %7 = arith.addf %3, %6 : vector<16x64xf32>
    %c0_6 = arith.constant 0 : index
    %c0_7 = arith.constant 0 : index
    %8 = vector.load %arg7[%c0_6, %c0_7] : memref<16x64xf32, #tpu.memory_space<vmem>>, vector<16x64xf32>
    tpu.vector_store %arg7[%c0_6, %c0_7], %7 {strides = array<i32>} : memref<16x64xf32, #tpu.memory_space<vmem>>, vector<16x64xf32>,
    %c0_i32_8 = arith.constant 0 : i32
    %9 = arith.cmpi eq, %arg2, %c0_i32_8 : i32
    %10 = arith.extui %9 : i1 to i32
    %c0_i32_9 = arith.constant 0 : i32
    %11 = arith.cmpi ne, %10, %c0_i32_9 : i32
    scf.if %11 {
      %c0_10 = arith.constant 0 : index
      %c0_11 = arith.constant 0 : index
      %12 = vector.load %arg7[%c0_10, %c0_11] : memref<16x64xf32, #tpu.memory_space<vmem>>, vector<16x64xf32>
      %c0_12 = arith.constant 0 : index
      %c0_13 = arith.constant 0 : index
      %13 = vector.load %arg5[%c0_12, %c0_13] : memref<1x64xf32, #tpu.memory_space<vmem>>, vector<1x64xf32>
      %14 = vector.broadcast %13 : vector<1x64xf32> to vector<16x64xf32>
      %15 = arith.addf %12, %14 : vector<16x64xf32>
      %cst_14 = arith.constant 0.000000e+00 : f32
      %16 = vector.broadcast %cst_14 : f32 to vector<16x64xf32>
      %17 = arith.maximumf %15, %16 : vector<16x64xf32>
      %18 = arith.truncf %17 : vector<16x64xf32> to vector<16x64xbf16>
      %c0_15 = arith.constant 0 : index
      %c0_16 = arith.constant 0 : index
      %19 = vector.load %arg6[%c0_15, %c0_16] : memref<16x64xbf16, #tpu.memory_space<vmem>>, vector<16x64xbf16>
      tpu.vector_store %arg6[%c0_15, %c0_16], %18 {strides = array<i32>} : memref<16x64xbf16, #tpu.memory_space<vmem>>, vector<16x64xbf16>,
    } else {
    }
    return
  }
  func.func @transform_0(%arg0: i32, %arg1: i32, %arg2: i32) -> (i32, i32) {
    %c0_i32 = arith.constant 0 : i32
    return %arg0, %arg2 : i32, i32
  }
  func.func @transform_1(%arg0: i32, %arg1: i32, %arg2: i32) -> (i32, i32) {
    %c0_i32 = arith.constant 0 : i32
    return %arg2, %arg1 : i32, i32
  }
  func.func @transform_2(%arg0: i32, %arg1: i32, %arg2: i32) -> (i32, i32) {
    %c0_i32 = arith.constant 0 : i32
    %c0_i32_0 = arith.constant 0 : i32
    return %c0_i32, %arg1 : i32, i32
  }
  func.func @transform_3(%arg0: i32, %arg1: i32, %arg2: i32) -> (i32, i32) {
    %c0_i32 = arith.constant 0 : i32
    return %arg0, %arg1 : i32, i32
  }
}

module attributes {stable_mosaic.version = 11 : i64} {
  func.func @_dense_ln_kernel(%arg0: i32, %arg1: i32, %arg2: memref<16x64xbf16, #tpu.memory_space<vmem>>, %arg3: memref<64x32xbf16, #tpu.memory_space<vmem>>, %arg4: memref<1x32xf32, #tpu.memory_space<vmem>>, %arg5: memref<16x32xbf16, #tpu.memory_space<vmem>>, %arg6: memref<1x32xf32, #tpu.memory_space<vmem>>, %arg7: memref<1x32xf32, #tpu.memory_space<vmem>>, %arg8: memref<16x32xbf16, #tpu.memory_space<vmem>>, %arg9: memref<16x32xf32, #tpu.memory_space<vmem>>) attributes {dimension_semantics = [#tpu.dimension_semantics<parallel>, #tpu.dimension_semantics<arbitrary>], iteration_bounds = array<i64: 1, 1>, scalar_prefetch = 0 : i64, scratch_operands = 1 : i64, tpu.core_type = #tpu.core_type<tc>, window_params = [{transform_indices = @transform_0, window_bounds = array<i64: 16, 64>}, {transform_indices = @transform_1, window_bounds = array<i64: 64, 32>}, {pipeline_mode = #tpu.pipeline_mode<synchronous>, transform_indices = @transform_2, window_bounds = array<i64: 1, 32>}, {transform_indices = @transform_3, window_bounds = array<i64: 16, 32>}, {pipeline_mode = #tpu.pipeline_mode<synchronous>, transform_indices = @transform_4, window_bounds = array<i64: 1, 32>}, {pipeline_mode = #tpu.pipeline_mode<synchronous>, transform_indices = @transform_5, window_bounds = array<i64: 1, 32>}, {transform_indices = @transform_6, window_bounds = array<i64: 16, 32>}]} {
    %c0_i32 = arith.constant 0 : i32
    %0 = arith.cmpi eq, %arg1, %c0_i32 : i32
    %1 = arith.extui %0 : i1 to i32
    %c0_i32_0 = arith.constant 0 : i32
    %2 = arith.cmpi ne, %1, %c0_i32_0 : i32
    scf.if %2 {
      %cst_10 = arith.constant 0.000000e+00 : f32
      %12 = vector.broadcast %cst_10 : f32 to vector<16x32xf32>
      %c0_11 = arith.constant 0 : index
      %c0_12 = arith.constant 0 : index
      %13 = vector.load %arg9[%c0_11, %c0_12] : memref<16x32xf32, #tpu.memory_space<vmem>>, vector<16x32xf32>
      tpu.vector_store %arg9[%c0_11, %c0_12], %12 {strides = array<i32>} : memref<16x32xf32, #tpu.memory_space<vmem>>, vector<16x32xf32>,
    } else {
    }
    %c0 = arith.constant 0 : index
    %c0_1 = arith.constant 0 : index
    %3 = vector.load %arg9[%c0, %c0_1] : memref<16x32xf32, #tpu.memory_space<vmem>>, vector<16x32xf32>
    %c0_2 = arith.constant 0 : index
    %c0_3 = arith.constant 0 : index
    %4 = vector.load %arg2[%c0_2, %c0_3] : memref<16x64xbf16, #tpu.memory_space<vmem>>, vector<16x64xbf16>
    %c0_4 = arith.constant 0 : index
    %c0_5 = arith.constant 0 : index
    %5 = vector.load %arg3[%c0_4, %c0_5] : memref<64x32xbf16, #tpu.memory_space<vmem>>, vector<64x32xbf16>
    %cst = arith.constant dense<0.000000e+00> : vector<16x32xf32>
    %6 = tpu.matmul %4, %5, %cst {dimension_numbers = #tpu.dot_dimension_numbers<[1], [0], [0], [1], [0, 0, 1, 1], [], []>} : vector<16x64xbf16>, vector<64x32xbf16>, vector<16x32xf32> -> vector<16x32xf32>
    %7 = arith.addf %3, %6 : vector<16x32xf32>
    %c0_6 = arith.constant 0 : index
    %c0_7 = arith.constant 0 : index
    %8 = vector.load %arg9[%c0_6, %c0_7] : memref<16x32xf32, #tpu.memory_space<vmem>>, vector<16x32xf32>
    tpu.vector_store %arg9[%c0_6, %c0_7], %7 {strides = array<i32>} : memref<16x32xf32, #tpu.memory_space<vmem>>, vector<16x32xf32>,
    %c0_i32_8 = arith.constant 0 : i32
    %9 = arith.cmpi eq, %arg1, %c0_i32_8 : i32
    %10 = arith.extui %9 : i1 to i32
    %c0_i32_9 = arith.constant 0 : i32
    %11 = arith.cmpi ne, %10, %c0_i32_9 : i32
    scf.if %11 {
      %c0_10 = arith.constant 0 : index
      %c0_11 = arith.constant 0 : index
      %12 = vector.load %arg9[%c0_10, %c0_11] : memref<16x32xf32, #tpu.memory_space<vmem>>, vector<16x32xf32>
      %c0_12 = arith.constant 0 : index
      %c0_13 = arith.constant 0 : index
      %13 = vector.load %arg4[%c0_12, %c0_13] : memref<1x32xf32, #tpu.memory_space<vmem>>, vector<1x32xf32>
      %14 = vector.broadcast %13 : vector<1x32xf32> to vector<16x32xf32>
      %15 = arith.addf %12, %14 : vector<16x32xf32>
      %c0_14 = arith.constant 0 : index
      %c0_15 = arith.constant 0 : index
      %16 = vector.load %arg5[%c0_14, %c0_15] : memref<16x32xbf16, #tpu.memory_space<vmem>>, vector<16x32xbf16>
      %17 = arith.extf %16 : vector<16x32xbf16> to vector<16x32xf32>
      %18 = arith.addf %15, %17 : vector<16x32xf32>
      %cst_16 = arith.constant dense<0.000000e+00> : vector<16xf32>
      %19 = vector.multi_reduction <add>, %18, %cst_16 [1] : vector<16x32xf32> to vector<16xf32>
      %20 = vector.shape_cast %19 : vector<16xf32> to vector<16x1xf32>
      %cst_17 = arith.constant 3.200000e+01 : f32
      %21 = vector.broadcast %cst_17 : f32 to vector<16x1xf32>
      %22 = arith.divf %20, %21 : vector<16x1xf32>
      %23 = vector.broadcast %22 : vector<16x1xf32> to vector<16x32xf32>
      %24 = arith.subf %18, %23 : vector<16x32xf32>
      %25 = arith.mulf %24, %24 : vector<16x32xf32>
      %cst_18 = arith.constant dense<0.000000e+00> : vector<16xf32>
      %26 = vector.multi_reduction <add>, %25, %cst_18 [1] : vector<16x32xf32> to vector<16xf32>
      %27 = vector.shape_cast %26 : vector<16xf32> to vector<16x1xf32>
      %cst_19 = arith.constant 3.200000e+01 : f32
      %28 = vector.broadcast %cst_19 : f32 to vector<16x1xf32>
      %29 = arith.divf %27, %28 : vector<16x1xf32>
      %cst_20 = arith.constant 9.99999996E-13 : f32
      %30 = vector.broadcast %cst_20 : f32 to vector<16x1xf32>
      %31 = arith.addf %29, %30 : vector<16x1xf32>
      %32 = math.rsqrt %31 : vector<16x1xf32>
      %33 = vector.broadcast %32 : vector<16x1xf32> to vector<16x32xf32>
      %34 = arith.mulf %24, %33 : vector<16x32xf32>
      %c0_21 = arith.constant 0 : index
      %c0_22 = arith.constant 0 : index
      %35 = vector.load %arg6[%c0_21, %c0_22] : memref<1x32xf32, #tpu.memory_space<vmem>>, vector<1x32xf32>
      %36 = vector.broadcast %35 : vector<1x32xf32> to vector<16x32xf32>
      %37 = arith.mulf %34, %36 : vector<16x32xf32>
      %c0_23 = arith.constant 0 : index
      %c0_24 = arith.constant 0 : index
      %38 = vector.load %arg7[%c0_23, %c0_24] : memref<1x32xf32, #tpu.memory_space<vmem>>, vector<1x32xf32>
      %39 = vector.broadcast %38 : vector<1x32xf32> to vector<16x32xf32>
      %40 = arith.addf %37, %39 : vector<16x32xf32>
      %41 = arith.truncf %40 : vector<16x32xf32> to vector<16x32xbf16>
      %c0_25 = arith.constant 0 : index
      %c0_26 = arith.constant 0 : index
      %42 = vector.load %arg8[%c0_25, %c0_26] : memref<16x32xbf16, #tpu.memory_space<vmem>>, vector<16x32xbf16>
      tpu.vector_store %arg8[%c0_25, %c0_26], %41 {strides = array<i32>} : memref<16x32xbf16, #tpu.memory_space<vmem>>, vector<16x32xbf16>,
    } else {
    }
    return
  }
  func.func @transform_0(%arg0: i32, %arg1: i32) -> (i32, i32) {
    %c0_i32 = arith.constant 0 : i32
    return %arg0, %arg1 : i32, i32
  }
  func.func @transform_1(%arg0: i32, %arg1: i32) -> (i32, i32) {
    %c0_i32 = arith.constant 0 : i32
    %c0_i32_0 = arith.constant 0 : i32
    return %arg1, %c0_i32 : i32, i32
  }
  func.func @transform_2(%arg0: i32, %arg1: i32) -> (i32, i32) {
    %c0_i32 = arith.constant 0 : i32
    %c0_i32_0 = arith.constant 0 : i32
    %c0_i32_1 = arith.constant 0 : i32
    return %c0_i32, %c0_i32_0 : i32, i32
  }
  func.func @transform_3(%arg0: i32, %arg1: i32) -> (i32, i32) {
    %c0_i32 = arith.constant 0 : i32
    %c0_i32_0 = arith.constant 0 : i32
    return %arg0, %c0_i32 : i32, i32
  }
  func.func @transform_4(%arg0: i32, %arg1: i32) -> (i32, i32) {
    %c0_i32 = arith.constant 0 : i32
    %c0_i32_0 = arith.constant 0 : i32
    %c0_i32_1 = arith.constant 0 : i32
    return %c0_i32, %c0_i32_0 : i32, i32
  }
  func.func @transform_5(%arg0: i32, %arg1: i32) -> (i32, i32) {
    %c0_i32 = arith.constant 0 : i32
    %c0_i32_0 = arith.constant 0 : i32
    %c0_i32_1 = arith.constant 0 : i32
    return %c0_i32, %c0_i32_0 : i32, i32
  }
  func.func @transform_6(%arg0: i32, %arg1: i32) -> (i32, i32) {
    %c0_i32 = arith.constant 0 : i32
    %c0_i32_0 = arith.constant 0 : i32
    return %arg0, %c0_i32 : i32, i32
  }
}

</mosaic_0001>

<bundles_post_ra>
// kernel: bert_classifier_forward.11
= control target key start
LH: loop header
LB: loop body
LE: loop exit
PB: predicated region body
PF: predicated region fallthrough
CT: control target
= control target key end

     0   :  { %vm18_vm0 = vcmask 261120   ;;  %vm72_vm1 = vcmask 257024   ;;  %s132_s0 = inlined_call_operand.vmem [shape: bf16[16,32], index: 0, kind: input, shape index: {}]   ;;  %s133_s1 = inlined_call_operand.vmem [shape: f32[1,32], index: 1, kind: input, shape index: {}]   ;;  %s134_s2 = inlined_call_operand.vmem [shape: f32[1,32], index: 2, kind: input, shape index: {}]   ;;  %s135_s3 = inlined_call_operand.vmem [shape: bf16[16,32], index: 3, kind: output, shape index: {}]  }
   0x1   :  { %v86_v0 = vld [vmem:[%s132_s0] sm:$0xff]  }
   0x2   :  { %v87_v1 = vunpack.c.l.bf16 %v86_v0  ;;  %v88_v2 = vunpack.c.h.bf16 %v86_v0  ;;  %v79_v22 = vld [vmem:[%s133_s1] ss:$0 sm:$0xff] }
   0x3   :  { %v80_v24 = vld [vmem:[%s134_s2] ss:$0 sm:$0xff] }
   0x4   :  { %v19_v3 = vsel %vm18_vm0, %v87_v1, 0.0  ;;  %v22_v4 = vsel %vm18_vm0, %v88_v2, 0.0 }
   0x5   :  { %20 = vadd.xlane.f32.xlu0 %v19_v3 }
   0x9   :  { %23 = vadd.xlane.f32.xlu0 %v22_v4 }
  0x8e   :  { %v21_v5 = vpop.xlane.xlu0 %20 }
  0x8f   :  { %v26_v6 = vmul.f32 0.03125, %v21_v5 }
  0x91   :  { %v28_v7 = vsub.f32 %v87_v1, %v26_v6 }
  0x92   :  { %v24_v8 = vpop.xlane.xlu0 %23 }
  0x93   :  { %v27_v9 = vmul.f32 0.03125, %v24_v8  ;;  %v30_v10 = vmul.f32 %v28_v7, %v28_v7 }
  0x95   :  { %v29_v11 = vsub.f32 %v88_v2, %v27_v9  ;;  %v32_v12 = vsel %vm18_vm0, %v30_v10, 0.0 }
  0x96   :  { %33 = vadd.xlane.f32.xlu1 %v32_v12 }
  0x97   :  { %v31_v13 = vmul.f32 %v29_v11, %v29_v11 }
  0x99   :  { %v35_v14 = vsel %vm18_vm0, %v31_v13, 0.0 }
  0x9a   :  { %36 = vadd.xlane.f32.xlu1 %v35_v14 }
 0x11f   :  { %v34_v15 = vpop.xlane.xlu1 %33 }
 0x120   :  { %v38_v16 = vmul.f32 0.03125, %v34_v15 }
 0x122   :  { %v40_v17 = vadd.f32 1e-12, %v38_v16 }
 0x123   :  { %v37_v18 = vpop.xlane.xlu1 %36 }
 0x124   :  { %89 = vrsqrt.f32 %v40_v17  ;;  %v39_v19 = vmul.f32 0.03125, %v37_v18 }
 0x126   :  { %v41_v20 = vadd.f32 1e-12, %v39_v19 }
 0x128   :  { %91 = vrsqrt.f32 %v41_v20 }
 0x131   :  { %v90_v21 = vpop.eup %89 }
 0x132   :  { %v44_v23 = vmul.f32 %v90_v21, %v28_v7 }
 0x134   :  { %v53_v25 = vmul.f32 %v79_v22, %v44_v23 }
 0x135   :  { %v92_v26 = vpop.eup %91 }
 0x136   :  { %v62_v27 = vadd.f32 %v80_v24, %v53_v25  ;;  %v45_v28 = vmul.f32 %v92_v26, %v29_v11 }
 0x138   :  { %v83_v29 = vpack.c.bf16 %v62_v27, %v62_v27  ;;  %v54_v30 = vmul.f32 %v79_v22, %v45_v28 }
 0x13a   :  { %73 = vst.msk [vmem:[%s135_s3] sm:$0xf] %vm72_vm1, %v83_v29  ;;  %v63_v31 = vadd.f32 %v80_v24, %v54_v30 }
 0x13c   :  { %v84_v32 = vpack.c.bf16 %v63_v31, %v63_v31 }
 0x13e   :  { %74 = vst.msk [vmem:[%s135_s3 + $0x4] sm:$0xf] %vm72_vm1, %v84_v32 }

// kernel: bert_classifier_forward.14
= control target key start
LH: loop header
LB: loop body
LE: loop exit
PB: predicated region body
PF: predicated region fallthrough
CT: control target
= control target key end

     0   :  { %vm28_vm0 = vcmask 261120   ;;  %v220_v0 = vmov 0.0   ;;  %vm221_vm1 = vmmov 0   ;;  %vm178_vm2 = vcmask 257024   ;;  %s293_s1 = inlined_call_operand.vmem [shape: bf16[32,32], index: 1, kind: input, shape index: {}]   ;;  %s294_s0 = inlined_call_operand.vmem [shape: bf16[16,32], index: 0, kind: input, shape index: {}]   ;;  %s295_s3 = inlined_call_operand.vmem [shape: bf16[16,32], index: 3, kind: input, shape index: {}]   ;;  %s296_s2 = inlined_call_operand.vmem [shape: f32[1,32], index: 2, kind: input, shape index: {}]   ;;  %s297_s4 = inlined_call_operand.vmem [shape: f32[1,32], index: 4, kind: input, shape index: {}]   ;;  %s298_s5 = inlined_call_operand.vmem [shape: f32[1,32], index: 5, kind: input, shape index: {}]   ;;  %s299_s6 = inlined_call_operand.vmem [shape: bf16[16,32], index: 6, kind: output, shape index: {}]  }
   0x1   :  { %203 = vmatprep.subr.bf16.mxu0 %v220_v0  ;;  %v213_v1 = vld [vmem:[%s293_s1 + $0x8] sm:$0xff]   ;;  %207 = vmatprep.mubr.msk.bf16.mxu0 %vm221_vm1, %v220_v0  ;;  %29 = vst.msk [vmem:[#allocation2] sm:$0xff] %vm28_vm0, %v220_v0  ;;  %30 = vst.msk [vmem:[#allocation2 + $0x8] sm:$0xff] %vm28_vm0, %v220_v0  ;;  %v214_v2 = vld [vmem:[%s293_s1] sm:$0xff]  }
   0x2   :  { %204 = vmatpush3.bf16.msra.mxu0 %v213_v1  ;;  %v215_v3 = vld [vmem:[%s294_s0] sm:$0xff]  }
   0x3   :  { %205 = vmatprep.subr.bf16.mxu0 %v220_v0  ;;  %v197_v12 = vld [vmem:[%s295_s3] sm:$0xff]  }
   0x4   :  { %v189_v13 = vld [vmem:[%s296_s2] ss:$0 sm:$0xff]  ;;  %v198_v14 = vunpack.c.l.bf16 %v197_v12  ;;  %v199_v18 = vunpack.c.h.bf16 %v197_v12 }
   0x5   :  { %v190_v41 = vld [vmem:[%s297_s4] ss:$0 sm:$0xff] }
   0x6   :  { %206 = vmatpush3.bf16.msra.mxu0 %v214_v2  ;;  %v191_v43 = vld [vmem:[%s298_s5] ss:$0 sm:$0xff] }
   0x8   :  { %v31_v4 = vld [vmem:[#allocation2] sm:$0xff]  ;;  %v32_v8 = vld [vmem:[#allocation2 + $0x8] sm:$0xff] }
   0x9   :  { %208 = vmatmul.mubr.msk.bf16.vlgmr.msra.gmra.mxu0 %vm28_vm0, %v215_v3 }
  0xc9   :  { %v94_v5 = vpop.f32.mrf.mxu0 }
  0xca   :  { %v101_v6 = vadd.f32 %v94_v5, %v31_v4 }
  0xcb   :  { %v209_v7 = vpop.f32.mrf.mxu0 }
  0xcc   :  { %103 = vst.msk [vmem:[#allocation2] sm:$0xff] %vm28_vm0, %v101_v6 }
  0xcd   :  { %v97_v9 = vpop.f32.mrf.mxu0 }
  0xce   :  { %v102_v10 = vadd.f32 %v97_v9, %v32_v8 }
  0xcf   :  { %v210_v11 = vpop.f32.mrf.mxu0 }
  0xd0   :  { %104 = vst.msk [vmem:[#allocation2 + $0x8] sm:$0xff] %vm28_vm0, %v102_v10 }
  0xd3   :  { %v108_v15 = vld [vmem:[#allocation2] sm:$0xff] }
  0xd4   :  { %v117_v16 = vadd.f32 %v189_v13, %v108_v15 }
  0xd6   :  { %v123_v17 = vadd.f32 %v198_v14, %v117_v16 }
  0xd7   :  { %v109_v19 = vld [vmem:[#allocation2 + $0x8] sm:$0xff] }
  0xd8   :  { %v125_v20 = vsel %vm28_vm0, %v123_v17, 0.0  ;;  %v118_v21 = vadd.f32 %v189_v13, %v109_v19 }
  0xd9   :  { %126 = vadd.xlane.f32.xlu0 %v125_v20 }
  0xda   :  { %v124_v22 = vadd.f32 %v199_v18, %v118_v21 }
  0xdc   :  { %v128_v23 = vsel %vm28_vm0, %v124_v22, 0.0 }
  0xdd   :  { %129 = vadd.xlane.f32.xlu0 %v128_v23 }
 0x162   :  { %v127_v24 = vpop.xlane.xlu0 %126 }
 0x163   :  { %v132_v25 = vmul.f32 0.03125, %v127_v24 }
 0x165   :  { %v134_v26 = vsub.f32 %v123_v17, %v132_v25 }
 0x166   :  { %v130_v27 = vpop.xlane.xlu0 %129 }
 0x167   :  { %v133_v28 = vmul.f32 0.03125, %v130_v27  ;;  %v136_v29 = vmul.f32 %v134_v26, %v134_v26 }
 0x169   :  { %v135_v30 = vsub.f32 %v124_v22, %v133_v28  ;;  %v138_v31 = vsel %vm28_vm0, %v136_v29, 0.0 }
 0x16a   :  { %139 = vadd.xlane.f32.xlu1 %v138_v31 }
 0x16b   :  { %v137_v32 = vmul.f32 %v135_v30, %v135_v30 }
 0x16d   :  { %v141_v33 = vsel %vm28_vm0, %v137_v32, 0.0 }
 0x16e   :  { %142 = vadd.xlane.f32.xlu1 %v141_v33 }
 0x1f3   :  { %v140_v34 = vpop.xlane.xlu1 %139 }
 0x1f4   :  { %v144_v35 = vmul.f32 0.03125, %v140_v34 }
 0x1f6   :  { %v146_v36 = vadd.f32 1e-12, %v144_v35 }
 0x1f7   :  { %v143_v37 = vpop.xlane.xlu1 %142 }
 0x1f8   :  { %216 = vrsqrt.f32 %v146_v36  ;;  %v145_v38 = vmul.f32 0.03125, %v143_v37 }
 0x1fa   :  { %v147_v39 = vadd.f32 1e-12, %v145_v38 }
 0x1fc   :  { %218 = vrsqrt.f32 %v147_v39 }
 0x205   :  { %v217_v40 = vpop.eup %216 }
 0x206   :  { %v150_v42 = vmul.f32 %v217_v40, %v134_v26 }
 0x208   :  { %v159_v44 = vmul.f32 %v190_v41, %v150_v42 }
 0x209   :  { %v219_v45 = vpop.eup %218 }
 0x20a   :  { %v168_v46 = vadd.f32 %v191_v43, %v159_v44  ;;  %v151_v47 = vmul.f32 %v219_v45, %v135_v30 }
 0x20c   :  { %v194_v48 = vpack.c.bf16 %v168_v46, %v168_v46  ;;  %v160_v49 = vmul.f32 %v190_v41, %v151_v47 }
 0x20e   :  { %179 = vst.msk [vmem:[%s299_s6] sm:$0xf] %vm178_vm2, %v194_v48  ;;  %v169_v50 = vadd.f32 %v191_v43, %v160_v49 }
 0x210   :  { %v195_v51 = vpack.c.bf16 %v169_v50, %v169_v50 }
 0x212   :  { %180 = vst.msk [vmem:[%s299_s6 + $0x4] sm:$0xf] %vm178_vm2, %v195_v51 }

// kernel: bert_classifier_forward.12
= control target key start
LH: loop header
LB: loop body
LE: loop exit
PB: predicated region body
PF: predicated region fallthrough
CT: control target
= control target key end

     0   :  { %vm19_vm0 = vcmask 785408   ;;  %v151_v0 = vmov 0.0   ;;  %vm152_vm1 = vmmov 0   ;;  %vm47_vm2 = vcmask 261120   ;;  %s195_s1 = inlined_call_operand.vmem [shape: bf16[32,96], index: 1, kind: input, shape index: {}]   ;;  %s196_s0 = inlined_call_operand.vmem [shape: bf16[16,32], index: 0, kind: input, shape index: {}]   ;;  %s197_s2 = inlined_call_operand.vmem [shape: f32[1,96], index: 2, kind: input, shape index: {}]   ;;  %s198_s3 = inlined_call_operand.vmem [shape: bf16[16,96], index: 3, kind: output, shape index: {}]  }
   0x1   :  { %138 = vmatprep.subr.bf16.mxu0 %v151_v0  ;;  %v148_v1 = vld [vmem:[%s195_s1 + $0x8] sm:$0xff]   ;;  %142 = vmatprep.mubr.msk.bf16.mxu0 %vm152_vm1, %v151_v0  ;;  %20 = vst.msk [vmem:[#allocation2] sm:$0xff] %vm19_vm0, %v151_v0  ;;  %21 = vst.msk [vmem:[#allocation2 + $0x8] sm:$0xff] %vm19_vm0, %v151_v0  ;;  %v149_v2 = vld [vmem:[%s195_s1] sm:$0xff]   ;;  %vm119_vm3 = vcmask 781312  }
   0x2   :  { %139 = vmatpush3.bf16.msra.mxu0 %v148_v1  ;;  %v150_v3 = vld [vmem:[%s196_s0] sm:$0xff]  }
   0x3   :  { %140 = vmatprep.subr.bf16.mxu0 %v151_v0  ;;  %v130_v12 = vld [vmem:[%s197_s2] ss:$0 sm:$0xff] }
   0x6   :  { %141 = vmatpush3.bf16.msra.mxu0 %v149_v2 }
   0x8   :  { %v22_v4 = vld [vmem:[#allocation2] sm:$0xff]  ;;  %v23_v8 = vld [vmem:[#allocation2 + $0x8] sm:$0xff] }
   0x9   :  { %143 = vmatmul.mubr.msk.bf16.vlgmr.msra.gmra.mxu0 %vm47_vm2, %v150_v3 }
  0xc9   :  { %v85_v5 = vpop.f32.mrf.mxu0 }
  0xca   :  { %v92_v6 = vadd.f32 %v85_v5, %v22_v4 }
  0xcb   :  { %v144_v7 = vpop.f32.mrf.mxu0 }
  0xcc   :  { %95 = vst.msk [vmem:[#allocation2] sm:$0xff] %vm19_vm0, %v92_v6 }
  0xcd   :  { %v88_v9 = vpop.f32.mrf.mxu0 }
  0xce   :  { %v93_v10 = vadd.f32 %v88_v9, %v23_v8 }
  0xcf   :  { %v145_v11 = vpop.f32.mrf.mxu0 }
  0xd0   :  { %96 = vst.msk [vmem:[#allocation2 + $0x8] sm:$0xff] %vm19_vm0, %v93_v10 }
  0xd3   :  { %v100_v13 = vld [vmem:[#allocation2] sm:$0xff] }
  0xd4   :  { %v109_v14 = vadd.f32 %v130_v12, %v100_v13 }
  0xd6   :  { %v133_v15 = vpack.c.bf16 %v109_v14, %v109_v14 }
  0xd7   :  { %v101_v16 = vld [vmem:[#allocation2 + $0x8] sm:$0xff] }
  0xd8   :  { %120 = vst.msk [vmem:[%s198_s3] sm:$0xf] %vm119_vm3, %v133_v15  ;;  %v110_v17 = vadd.f32 %v130_v12, %v101_v16 }
  0xda   :  { %v134_v18 = vpack.c.bf16 %v110_v17, %v110_v17 }
  0xdc   :  { %121 = vst.msk [vmem:[%s198_s3 + $0x4] sm:$0xf] %vm119_vm3, %v134_v18 }

// kernel: bert_classifier_forward.13
= control target key start
LH: loop header
LB: loop body
LE: loop exit
PB: predicated region body
PF: predicated region fallthrough
CT: control target
= control target key end

     0   :  { %s890_s9 = smov 0   ;;  %s991_s0 = inlined_call_operand.vmem [shape: bf16[2,8,96], index: 0, kind: input, shape index: {}]   ;;  %s992_s1 = inlined_call_operand.vmem [shape: f32[2,1,8], index: 1, kind: input, shape index: {}]   ;;  %s993_s2 = inlined_call_operand.vmem [shape: bf16[2,8,32], index: 2, kind: output, shape index: {}]  }
   0x1 LB: > { %s722_s10 = sadd.s32 4294967295, %s857_s9   ;;  %p726_p0 = scmp.ge.s32.totalorder %s857_s9, 1  ;;  %s857_s9 = sphi %s890_s9, %s12_s9  }
   0x2   : > { %p119_p1 = scmp.lt.s32.totalorder %s857_s9, 3 }
   0x4   : > { %p120_p2 = pnand %p726_p0, %p119_p1 }
   0x5   : > { %p142_p3 = scmp.lt.s32.totalorder (!%p120_p2), %s722_s10, 1  ;;  %s861_s15 = smov (!%p120_p2), 96  }
   0x6   : > { %123 = sbr.rel (%p120_p2) target bundleno = 1550 (0x60e), region = 28  ;;  %s862_s16 = smov (!%p120_p2), 64  }
   0x7   : > { %s863_s17 = smov (!%p120_p2), 88   ;;  %s864_s21 = smov (!%p120_p2), 72  }
   0x8   : > { %s865_s22 = smov (!%p120_p2), 120   ;;  %s866_s23 = smov (!%p120_p2), 80  }
   0x9   : > { %s867_s24 = smov (!%p120_p2), 112   ;;  %s868_s25 = smov (!%p120_p2), 104  }
   0xa   : > { %s869_s26 = smov (!%p120_p2), 56   ;;  %s870_s27 = smov (!%p120_p2), 48  }
   0xb   : > { %v859_v0 = vmov 0.0   ;;  %vm860_vm0 = vmmov 0   ;;  %s995_s10 = smov (!%p142_p3, %s722_s10), 1  ;;  %vm171_vm1 = vcmask 64512   ;;  %v161_v10 = vlaneseq  ;;  %s871_s28 = smov 40  }
   0xc   : > { %759 = vmatprep.subr.bf16.mxu0 %v859_v0  ;;  %761 = vmatprep.mubr.msk.bf16.mxu0 %vm860_vm0, %v859_v0  ;;  %s727_s11 = sshll.u32 %s995_s10, 2  ;;  %s148_s20 = scalar_lea.vmem %s992_s1, %s995_s10  ;;  %vm236_vm2 = vcmask 1043456   ;;  %vm404_vm3 = vcmask 130112   ;;  %vm529_vm4 = vcmask 195712   ;;  %vm654_vm5 = vcmask 261312  }
   0xd   : > { %765 = vmatprep.subr.bf16.mxu1 %v859_v0  ;;  %767 = vmatprep.mubr.msk.bf16.mxu1 %vm860_vm0, %v859_v0  ;;  %s912_s14 = scalar_lea.vmem %s991_s0, %s727_s11  ;;  %v162_v11 = vshrl.u32 %v161_v10, 7  ;;  %v154_v12 = vld [vmem:[%s148_s20] sm:$0x1]  ;;  %s872_s29 = smov 8   ;;  %vm658_vm6 = vcmask 257024  }
   0xe   : > { %v156_v1 = vld [vmem:[%s912_s14] sm:$0xf]  ;;  %v155_v13 = vmul.f32 -1e+09, %v154_v12  ;;  %s873_s30 = smov 16   ;;  %s874_s3 = smov 24  }
   0xf   : > { %v729_v2 = vcombine.low %v156_v1, %v156_v1  ;;  %v157_v3 = vunpack.c.l.bf16 %v156_v1  ;;  %v281_v8 = vld [vmem:[%s912_s14] sm:$0xf]  ;;  %v163_v14 = vsub.s32 0, %v162_v11  ;;  %s152_s6 = scalar_lea.vmem %s993_s2, %s727_s11 }
  0x10   : > { %v921_v9 = vcombine.low %v281_v8, %v281_v8  ;;  %v531_v22 = vld [vmem:[%s912_s14] sm:$0xf]  ;;  %v282_v31 = vunpack.c.l.bf16 %v281_v8 }
  0x11   : > { %169 = vrot.lane.b32.xlu0 %v729_v2, %s861_s15  ;;  %v158_v5 = vmul.f32 0.35355338, %v157_v3  ;;  %231 = vrot.lane.b32.xlu1 %v729_v2, %s862_s16  ;;  %v928_v15 = vrot.slane %v155_v13, %v163_v14  ;;  %v933_v23 = vcombine.low %v531_v22, %v531_v22  ;;  %v406_v33 = vld [vmem:[%s912_s14] sm:$0xf]  ;;  %v532_v38 = vunpack.c.l.bf16 %v531_v22 }
  0x12   : > { %v283_v32 = vmul.f32 0.35355338, %v282_v31  ;;  %v407_v35 = vunpack.c.l.bf16 %v406_v33  ;;  %v940_v36 = vcombine.low %v406_v33, %v406_v33 }
  0x13   : > { %v159_v7 = vpack.c.bf16 %v158_v5, %v158_v5  ;;  %v533_v40 = vmul.f32 0.35355338, %v532_v38 }
  0x14   : > { %v284_v34 = vpack.c.bf16 %v283_v32, %v283_v32  ;;  %v408_v37 = vmul.f32 0.35355338, %v407_v35 }
  0x15   : > { %291 = vrot.lane.b32.xlu1 %v921_v9, %s863_s17  ;;  %v534_v41 = vpack.c.bf16 %v533_v40, %v533_v40 }
  0x16   : > { %v409_v39 = vpack.c.bf16 %v408_v37, %v408_v37 }
  0x83   : > { %v170_v4 = vpop.permute.xlu0 %169  ;;  %v232_v24 = vpop.permute.xlu1 %231 }
  0x84   : > { %v176_v6 = vsel %vm171_vm1, %v170_v4, 0  ;;  %v238_v25 = vsel %vm236_vm2, %v232_v24, 0 }
  0x85   : > { %760 = vmatpush3.bf16.xpose.msra.mxu0 %v176_v6  ;;  %766 = vmatpush3.bf16.msra.mxu1 %v238_v25 }
  0x86   : > { %777 = vmatprep.subr.bf16.mxu0 %v859_v0  ;;  %771 = vmatprep.subr.bf16.mxu1 %v859_v0 }
  0x87   : > { %v292_v42 = vpop.permute.xlu1 %291 }
  0x88   : > { %v297_v49 = vsel %vm171_vm1, %v292_v42, 0 }
  0x8c   : > { %762 = vmatmul.mubr.msk.bf16.vlgmr.msra.gmra.mxu0 %vm171_vm1, %v159_v7 }
  0x8d   : > { %779 = vmatprep.mubr.msk.bf16.mxu0 %vm860_vm0, %v859_v0 }
 0x14c   : > { %v212_v16 = vpop.f32.mrf.mxu0 }
 0x14d   : > { %v213_v17 = vadd.f32 %v212_v16, %v928_v15 }
 0x14e   : > { %v763_v18 = vpop.f32.mrf.mxu0 }
 0x14f   : > { %v218_v19 = vsel %vm171_vm1, %v213_v17, -inf }
 0x150   : > { %219 = vmax.xlane.f32.xlu0 %v218_v19  ;;  %v215_v20 = vpop.f32.mrf.mxu0 }
 0x152   : > { %v764_v21 = vpop.f32.mrf.mxu0 }
 0x166   : > { %541 = vrot.lane.b32.xlu0 %v933_v23, %s864_s21 }
 0x1d9   : > { %v220_v26 = vpop.xlane.xlu0 %219 }
 0x1da   : > { %v221_v27 = vsub.f32 %v213_v17, %v220_v26 }
 0x1dc   : > { %v222_v28 = vmul.f32 1.442695, %v221_v27 }
 0x1dd   : > { %v542_v52 = vpop.permute.xlu0 %541 }
 0x1de   : > { %835 = vpow2.f32 %v222_v28  ;;  %v547_v54 = vsel %vm171_vm1, %v542_v52, 0 }
 0x1eb   : > { %v836_v29 = vpop.eup %835 }
 0x1ec   : > { %v224_v30 = vsel %vm171_vm1, %v836_v29, 0.0 }
 0x1ed   : > { %225 = vadd.xlane.f32.xlu1 %v224_v30 }
 0x1fe   : > { %286 = vrot.lane.b32.xlu1 %v284_v34, %s865_s22 }
 0x202   : > { %416 = vrot.lane.b32.xlu1 %v940_v36, %s866_s23 }
 0x206   : > { %411 = vrot.lane.b32.xlu1 %v409_v39, %s867_s24 }
 0x20a   : > { %536 = vrot.lane.b32.xlu1 %v534_v41, %s868_s25 }
 0x276   : > { %v226_v43 = vpop.xlane.xlu1 %225 }
 0x277   : > { %v227_v44 = vmax.f32 %v226_v43, 1e-30 }
 0x279   : > { %837 = vrcp.f32 %v227_v44 }
 0x27a   : > { %v287_v47 = vpop.permute.xlu1 %286 }
 0x27e   : > { %v417_v50 = vpop.permute.xlu1 %416 }
 0x27f   : > { %v422_v51 = vsel %vm171_vm1, %v417_v50, 0 }
 0x282   : > { %v412_v53 = vpop.permute.xlu1 %411 }
 0x286   : > { %v838_v45 = vpop.eup %837  ;;  %v537_v55 = vpop.permute.xlu1 %536 }
 0x287   : > { %v229_v46 = vmul.f32 %v838_v45, %v836_v29 }
 0x289   : > { %v230_v48 = vpack.c.bf16 %v229_v46, %v229_v46 }
 0x28b   : > { %768 = vmatmul.mubr.msk.bf16.vlgmr.msra.gmra.mxu1 %vm171_vm1, %v230_v48 }
 0x28c   : > { %772 = vmatpush3.bf16.xpose.msra.mxu1 %v297_v49  ;;  %773 = vmatprep.mubr.msk.bf16.mxu1 %vm860_vm0, %v859_v0 }
 0x28d   : > { %783 = vmatprep.subr.bf16.mxu1 %v859_v0 }
 0x293   : > { %774 = vmatmul.mubr.msk.bf16.vlgmr.msra.gmra.mxu1 %vm171_vm1, %v287_v47 }
 0x294   : > { %784 = vmatpush3.bf16.xpose.msra.mxu1 %v422_v51  ;;  %785 = vmatprep.mubr.msk.bf16.mxu1 %vm860_vm0, %v859_v0 }
 0x295   : > { %795 = vmatprep.subr.bf16.mxu1 %v859_v0 }
 0x29b   : > { %786 = vmatmul.mubr.msk.bf16.vlgmr.msra.gmra.mxu1 %vm171_vm1, %v412_v53 }
 0x29c   : > { %796 = vmatpush3.bf16.xpose.msra.mxu1 %v547_v54  ;;  %797 = vmatprep.mubr.msk.bf16.mxu1 %vm860_vm0, %v859_v0 }
 0x2a3   : > { %798 = vmatmul.mubr.msk.bf16.vlgmr.msra.gmra.mxu1 %vm171_vm1, %v537_v55 }
 0x34b   : > { %v274_v56 = vpop.f32.mrf.mxu1 }
 0x34c   : > { %280 = vst.msk [vmem:[#allocation2] sm:$0xff] %vm171_vm1, %v274_v56 }
 0x34d   : > { %v769_v57 = vpop.f32.mrf.mxu1 }
 0x34f   : > { %v277_v58 = vpop.f32.mrf.mxu1 }
 0x351   : > { %v770_v59 = vpop.f32.mrf.mxu1 }
 0x353   : > { %v333_v60 = vpop.f32.mrf.mxu1 }
 0x354   : > { %v334_v61 = vadd.f32 %v333_v60, %v928_v15 }
 0x355   : > { %v775_v62 = vpop.f32.mrf.mxu1 }
 0x356   : > { %v339_v63 = vsel %vm171_vm1, %v334_v61, -inf }
 0x357   : > { %340 = vmax.xlane.f32.xlu1 %v339_v63  ;;  %v336_v1 = vpop.f32.mrf.mxu1 }
 0x359   : > { %v776_v2 = vpop.f32.mrf.mxu1 }
 0x35b   : > { %v458_v3 = vpop.f32.mrf.mxu1 }
 0x35c   : > { %v459_v4 = vadd.f32 %v458_v3, %v928_v15 }
 0x35d   : > { %v787_v5 = vpop.f32.mrf.mxu1 }
 0x35e   : > { %v464_v6 = vsel %vm171_vm1, %v459_v4, -inf }
 0x35f   : > { %465 = vmax.xlane.f32.xlu0 %v464_v6  ;;  %v461_v7 = vpop.f32.mrf.mxu1 }
 0x361   : > { %v788_v8 = vpop.f32.mrf.mxu1 }
 0x363   : > { %v583_v10 = vpop.f32.mrf.mxu1 }
 0x364   : > { %v584_v11 = vadd.f32 %v583_v10, %v928_v15 }
 0x365   : > { %v799_v12 = vpop.f32.mrf.mxu1 }
 0x366   : > { %v589_v13 = vsel %vm171_vm1, %v584_v11, -inf }
 0x367   : > { %590 = vmax.xlane.f32.xlu1 %v589_v13  ;;  %v586_v14 = vpop.f32.mrf.mxu1 }
 0x369   : > { %v800_v16 = vpop.f32.mrf.mxu1 }
 0x3e0   : > { %v341_v17 = vpop.xlane.xlu1 %340 }
 0x3e1   : > { %v342_v18 = vsub.f32 %v334_v61, %v341_v17 }
 0x3e3   : > { %v343_v19 = vmul.f32 1.442695, %v342_v18 }
 0x3e5   : > { %839 = vpow2.f32 %v343_v19 }
 0x3e8   : > { %v466_v27 = vpop.xlane.xlu0 %465 }
 0x3e9   : > { %v467_v28 = vsub.f32 %v459_v4, %v466_v27 }
 0x3eb   : > { %v468_v29 = vmul.f32 1.442695, %v467_v28 }
 0x3f0   : > { %v591_v20 = vpop.xlane.xlu1 %590 }
 0x3f1   : > { %v592_v21 = vsub.f32 %v584_v11, %v591_v20 }
 0x3f2   : > { %v840_v22 = vpop.eup %839 }
 0x3f3   : > { %v593_v24 = vmul.f32 1.442695, %v592_v21  ;;  %v345_v25 = vsel %vm171_vm1, %v840_v22, 0.0 }
 0x3f4   : > { %346 = vadd.xlane.f32.xlu1 %v345_v25 }
 0x3f5   : > { %841 = vpow2.f32 %v593_v24 }
 0x3f6   : > { %843 = vpow2.f32 %v468_v29 }
 0x402   : > { %v842_v26 = vpop.eup %841 }
 0x403   : > { %v595_v15 = vsel %vm171_vm1, %v842_v26, 0.0  ;;  %v844_v30 = vpop.eup %843 }
 0x404   : > { %596 = vadd.xlane.f32.xlu0 %v595_v15  ;;  %v470_v31 = vsel %vm171_vm1, %v844_v30, 0.0 }
 0x405   : > { %352 = vrot.lane.b32.xlu1 %v921_v9, %s869_s26 }
 0x41a   : > { %477 = vrot.lane.b32.xlu0 %v940_v36, %s870_s27 }
 0x429   : > { %471 = vadd.xlane.f32.xlu1 %v470_v31 }
 0x43a   : > { %602 = vrot.lane.b32.xlu1 %v933_v23, %s871_s28 }
 0x47d   : > { %v347_v32 = vpop.xlane.xlu1 %346 }
 0x47e   : > { %v348_v33 = vmax.f32 %v347_v32, 1e-30 }
 0x480   : > { %845 = vrcp.f32 %v348_v33 }
 0x481   : > { %v353_v34 = vpop.permute.xlu1 %352 }
 0x482   : > { %v358_v9 = vsel %vm236_vm2, %v353_v34, 0 }
 0x483   : > { %778 = vmatpush3.bf16.msra.mxu0 %v358_v9 }
 0x484   : > { %789 = vmatprep.subr.bf16.mxu0 %v859_v0 }
 0x48d   : > { %v846_v35 = vpop.eup %845  ;;  %v597_v37 = vpop.xlane.xlu0 %596 }
 0x48e   : > { %v350_v38 = vmul.f32 %v846_v35, %v840_v22  ;;  %v598_v42 = vmax.f32 %v597_v37, 1e-30 }
 0x490   : > { %v351_v36 = vpack.c.bf16 %v350_v38, %v350_v38 }
 0x491   : > { %v478_v39 = vpop.permute.xlu0 %477 }
 0x492   : > { %780 = vmatmul.mubr.msk.bf16.vlgmr.msra.gmra.mxu0 %vm171_vm1, %v351_v36  ;;  %v483_v40 = vsel %vm236_vm2, %v478_v39, 0 }
 0x493   : > { %790 = vmatpush3.bf16.msra.mxu0 %v483_v40  ;;  %791 = vmatprep.mubr.msk.bf16.mxu0 %vm860_vm0, %v859_v0 }
 0x494   : > { %801 = vmatprep.subr.bf16.mxu0 %v859_v0 }
 0x4b2   : > { %v472_v23 = vpop.xlane.xlu1 %471 }
 0x4b3   : > { %v473_v41 = vmax.f32 %v472_v23, 1e-30 }
 0x4b5   : > { %847 = vrcp.f32 %v473_v41 }
 0x4b6   : > { %849 = vrcp.f32 %v598_v42  ;;  %v603_v44 = vpop.permute.xlu1 %602 }
 0x4b7   : > { %v608_v46 = vsel %vm236_vm2, %v603_v44, 0 }
 0x4c2   : > { %v848_v43 = vpop.eup %847 }
 0x4c3   : > { %v475_v45 = vmul.f32 %v848_v43, %v844_v30  ;;  %v850_v48 = vpop.eup %849 }
 0x4c4   : > { %v600_v49 = vmul.f32 %v850_v48, %v842_v26 }
 0x4c5   : > { %v476_v47 = vpack.c.bf16 %v475_v45, %v475_v45 }
 0x4c6   : > { %v601_v50 = vpack.c.bf16 %v600_v49, %v600_v49 }
 0x4c7   : > { %792 = vmatmul.mubr.msk.bf16.vlgmr.msra.gmra.mxu0 %vm171_vm1, %v476_v47 }
 0x4c8   : > { %802 = vmatpush3.bf16.msra.mxu0 %v608_v46  ;;  %803 = vmatprep.mubr.msk.bf16.mxu0 %vm860_vm0, %v859_v0 }
 0x4cf   : > { %804 = vmatmul.mubr.msk.bf16.vlgmr.msra.gmra.mxu0 %vm171_vm1, %v601_v50 }
 0x552   : > { %v394_v51 = vpop.f32.mrf.mxu0 }
 0x553   : > { %401 = vrot.lane.b32.xlu1 %v394_v51, %s872_s29 }
 0x554   : > { %v781_v52 = vpop.f32.mrf.mxu0 }
 0x556   : > { %v397_v53 = vpop.f32.mrf.mxu0 }
 0x558   : > { %v782_v54 = vpop.f32.mrf.mxu0 }
 0x587   : > { %v519_v55 = vpop.f32.mrf.mxu0 }
 0x588   : > { %526 = vrot.lane.b32.xlu0 %v519_v55, %s873_s30 }
 0x589   : > { %v793_v56 = vpop.f32.mrf.mxu0 }
 0x58b   : > { %v522_v57 = vpop.f32.mrf.mxu0 }
 0x58d   : > { %v794_v58 = vpop.f32.mrf.mxu0 }
 0x58f   : > { %v644_v59 = vpop.f32.mrf.mxu0 }
 0x590   : > { %651 = vrot.lane.b32.xlu1 %v644_v59, %s874_s3 }
 0x591   : > { %v805_v0 = vpop.f32.mrf.mxu0 }
 0x593   : > { %v647_v60 = vpop.f32.mrf.mxu0 }
 0x595   : > { %v806_v61 = vpop.f32.mrf.mxu0 }
 0x5c5   : > { %v402_v62 = vpop.permute.xlu1 %401 }
 0x5c6   : > { %405 = vst.msk [vmem:[#allocation2] sm:$0xff] %vm404_vm3, %v402_v62 }
 0x5fa   : > { %v527_v63 = vpop.permute.xlu0 %526 }
 0x5fb   : > { %530 = vst.msk [vmem:[#allocation2] sm:$0xff] %vm529_vm4, %v527_v63 }
 0x602   : > { %v652_v1 = vpop.permute.xlu1 %651 }
 0x603   : > { %655 = vst.msk [vmem:[#allocation2] sm:$0xff] %vm654_vm5, %v652_v1 }
 0x60a   : > { %v656_v2 = vld [vmem:[#allocation2] sm:$0xff] }
 0x60b   : > { %v657_v3 = vpack.c.bf16 %v656_v2, %v656_v2 }
 0x60d   : > { %659 = vst.msk [vmem:[%s152_s6] sm:$0xf] %vm658_vm6, %v657_v3 }
 0x60e PF: > { %s12_s9 = sadd.s32 1, %s857_s9  }
 0x60f   : > { %p9_p4 = scmp.ge.s32.totalorder %s12_s9, 4  }
 0x611   :  { %11 = sbr.rel (!%p9_p4) target bundleno = 1 (0x1), region = 61 }

// kernel: bert_classifier_forward.15
= control target key start
LH: loop header
LB: loop body
LE: loop exit
PB: predicated region body
PF: predicated region fallthrough
CT: control target
= control target key end

     0   :  { %vm19_vm0 = vcmask 523264   ;;  %v153_v0 = vmov 0.0   ;;  %vm154_vm1 = vmmov 0   ;;  %vm47_vm2 = vcmask 261120   ;;  %s197_s1 = inlined_call_operand.vmem [shape: bf16[32,64], index: 1, kind: input, shape index: {}]   ;;  %s198_s0 = inlined_call_operand.vmem [shape: bf16[16,32], index: 0, kind: input, shape index: {}]   ;;  %s199_s2 = inlined_call_operand.vmem [shape: f32[1,64], index: 2, kind: input, shape index: {}]   ;;  %s200_s3 = inlined_call_operand.vmem [shape: bf16[16,64], index: 3, kind: output, shape index: {}]  }
   0x1   :  { %140 = vmatprep.subr.bf16.mxu0 %v153_v0  ;;  %v150_v1 = vld [vmem:[%s197_s1 + $0x8] sm:$0xff]   ;;  %144 = vmatprep.mubr.msk.bf16.mxu0 %vm154_vm1, %v153_v0  ;;  %20 = vst.msk [vmem:[#allocation2] sm:$0xff] %vm19_vm0, %v153_v0  ;;  %21 = vst.msk [vmem:[#allocation2 + $0x8] sm:$0xff] %vm19_vm0, %v153_v0  ;;  %v151_v2 = vld [vmem:[%s197_s1] sm:$0xff]   ;;  %vm121_vm3 = vcmask 519168  }
   0x2   :  { %141 = vmatpush3.bf16.msra.mxu0 %v150_v1  ;;  %v152_v3 = vld [vmem:[%s198_s0] sm:$0xff]  }
   0x3   :  { %142 = vmatprep.subr.bf16.mxu0 %v153_v0  ;;  %v132_v12 = vld [vmem:[%s199_s2] ss:$0 sm:$0xff] }
   0x6   :  { %143 = vmatpush3.bf16.msra.mxu0 %v151_v2 }
   0x8   :  { %v22_v4 = vld [vmem:[#allocation2] sm:$0xff]  ;;  %v23_v8 = vld [vmem:[#allocation2 + $0x8] sm:$0xff] }
   0x9   :  { %145 = vmatmul.mubr.msk.bf16.vlgmr.msra.gmra.mxu0 %vm47_vm2, %v152_v3 }
  0xc9   :  { %v85_v5 = vpop.f32.mrf.mxu0 }
  0xca   :  { %v92_v6 = vadd.f32 %v85_v5, %v22_v4 }
  0xcb   :  { %v146_v7 = vpop.f32.mrf.mxu0 }
  0xcc   :  { %95 = vst.msk [vmem:[#allocation2] sm:$0xff] %vm19_vm0, %v92_v6 }
  0xcd   :  { %v88_v9 = vpop.f32.mrf.mxu0 }
  0xce   :  { %v93_v10 = vadd.f32 %v88_v9, %v23_v8 }
  0xcf   :  { %v147_v11 = vpop.f32.mrf.mxu0 }
  0xd0   :  { %96 = vst.msk [vmem:[#allocation2 + $0x8] sm:$0xff] %vm19_vm0, %v93_v10 }
  0xd3   :  { %v100_v13 = vld [vmem:[#allocation2] sm:$0xff] }
  0xd4   :  { %v109_v14 = vadd.f32 %v132_v12, %v100_v13 }
  0xd6   :  { %v111_v15 = vmax.f32 %v109_v14, 0.0 }
  0xd7   :  { %v101_v16 = vld [vmem:[#allocation2 + $0x8] sm:$0xff] }
  0xd8   :  { %v135_v17 = vpack.c.bf16 %v111_v15, %v111_v15  ;;  %v110_v18 = vadd.f32 %v132_v12, %v101_v16 }
  0xda   :  { %122 = vst.msk [vmem:[%s200_s3] sm:$0xf] %vm121_vm3, %v135_v17  ;;  %v112_v19 = vmax.f32 %v110_v18, 0.0 }
  0xdc   :  { %v136_v20 = vpack.c.bf16 %v112_v19, %v112_v19 }
  0xde   :  { %123 = vst.msk [vmem:[%s200_s3 + $0x4] sm:$0xf] %vm121_vm3, %v136_v20 }

// kernel: bert_classifier_forward.16
= control target key start
LH: loop header
LB: loop body
LE: loop exit
PB: predicated region body
PF: predicated region fallthrough
CT: control target
= control target key end

     0   :  { %vm28_vm0 = vcmask 261120   ;;  %v247_v0 = vmov 0.0   ;;  %vm248_vm1 = vmmov 0   ;;  %vm72_vm2 = vcmask 523264   ;;  %s325_s1 = inlined_call_operand.vmem [shape: bf16[64,32], index: 1, kind: input, shape index: {}]   ;;  %s326_s0 = inlined_call_operand.vmem [shape: bf16[16,64], index: 0, kind: input, shape index: {}]   ;;  %s327_s3 = inlined_call_operand.vmem [shape: bf16[16,32], index: 3, kind: input, shape index: {}]   ;;  %s328_s2 = inlined_call_operand.vmem [shape: f32[1,32], index: 2, kind: input, shape index: {}]   ;;  %s329_s4 = inlined_call_operand.vmem [shape: f32[1,32], index: 4, kind: input, shape index: {}]   ;;  %s330_s5 = inlined_call_operand.vmem [shape: f32[1,32], index: 5, kind: input, shape index: {}]   ;;  %s331_s6 = inlined_call_operand.vmem [shape: bf16[16,32], index: 6, kind: output, shape index: {}]  }
   0x1   :  { %224 = vmatprep.subr.bf16.mxu0 %v247_v0  ;;  %v238_v1 = vld [vmem:[%s325_s1 + $0x18] sm:$0xff]   ;;  %232 = vmatprep.mubr.msk.bf16.mxu0 %vm248_vm1, %v247_v0  ;;  %29 = vst.msk [vmem:[#allocation2] sm:$0xff] %vm28_vm0, %v247_v0  ;;  %30 = vst.msk [vmem:[#allocation2 + $0x8] sm:$0xff] %vm28_vm0, %v247_v0  ;;  %v239_v2 = vld [vmem:[%s325_s1 + $0x10] sm:$0xff]   ;;  %vm195_vm3 = vcmask 257024  }
   0x2   :  { %225 = vmatpush3.bf16.msra.mxu0 %v238_v1  ;;  %v240_v3 = vld [vmem:[%s325_s1 + $0x8] sm:$0xff]   ;;  %v241_v4 = vld [vmem:[%s325_s1] sm:$0xff]  }
   0x3   :  { %226 = vmatprep.subr.bf16.mxu0 %v247_v0  ;;  %v242_v5 = vld [vmem:[%s326_s0] sm:$0xff]  }
   0x4   :  { %v216_v14 = vld [vmem:[%s327_s3] sm:$0xff]  }
   0x5   :  { %v208_v15 = vld [vmem:[%s328_s2] ss:$0 sm:$0xff]  ;;  %v217_v16 = vunpack.c.l.bf16 %v216_v14  ;;  %v218_v20 = vunpack.c.h.bf16 %v216_v14 }
   0x6   :  { %227 = vmatpush3.bf16.msra.mxu0 %v239_v2  ;;  %v209_v43 = vld [vmem:[%s329_s4] ss:$0 sm:$0xff] }
   0x7   :  { %228 = vmatprep.subr.bf16.mxu0 %v247_v0  ;;  %v210_v45 = vld [vmem:[%s330_s5] ss:$0 sm:$0xff] }
   0x8   :  { %v31_v6 = vld [vmem:[#allocation2] sm:$0xff]  ;;  %v32_v10 = vld [vmem:[#allocation2 + $0x8] sm:$0xff] }
   0xa   :  { %229 = vmatpush3.bf16.msra.mxu0 %v240_v3 }
   0xb   :  { %230 = vmatprep.subr.bf16.mxu0 %v247_v0 }
   0xe   :  { %231 = vmatpush3.bf16.msra.mxu0 %v241_v4 }
  0x11   :  { %233 = vmatmul.mubr.msk.bf16.vlgmr.msra.gmra.mxu0 %vm72_vm2, %v242_v5 }
  0xd1   :  { %v110_v7 = vpop.f32.mrf.mxu0 }
  0xd2   :  { %v117_v8 = vadd.f32 %v110_v7, %v31_v6 }
  0xd3   :  { %v234_v9 = vpop.f32.mrf.mxu0 }
  0xd4   :  { %120 = vst.msk [vmem:[#allocation2] sm:$0xff] %vm28_vm0, %v117_v8 }
  0xd5   :  { %v113_v11 = vpop.f32.mrf.mxu0 }
  0xd6   :  { %v118_v12 = vadd.f32 %v113_v11, %v32_v10 }
  0xd7   :  { %v235_v13 = vpop.f32.mrf.mxu0 }
  0xd8   :  { %121 = vst.msk [vmem:[#allocation2 + $0x8] sm:$0xff] %vm28_vm0, %v118_v12 }
  0xdb   :  { %v125_v17 = vld [vmem:[#allocation2] sm:$0xff] }
  0xdc   :  { %v134_v18 = vadd.f32 %v208_v15, %v125_v17 }
  0xde   :  { %v140_v19 = vadd.f32 %v217_v16, %v134_v18 }
  0xdf   :  { %v126_v21 = vld [vmem:[#allocation2 + $0x8] sm:$0xff] }
  0xe0   :  { %v142_v22 = vsel %vm28_vm0, %v140_v19, 0.0  ;;  %v135_v23 = vadd.f32 %v208_v15, %v126_v21 }
  0xe1   :  { %143 = vadd.xlane.f32.xlu0 %v142_v22 }
  0xe2   :  { %v141_v24 = vadd.f32 %v218_v20, %v135_v23 }
  0xe4   :  { %v145_v25 = vsel %vm28_vm0, %v141_v24, 0.0 }
  0xe5   :  { %146 = vadd.xlane.f32.xlu0 %v145_v25 }
 0x16a   :  { %v144_v26 = vpop.xlane.xlu0 %143 }
 0x16b   :  { %v149_v27 = vmul.f32 0.03125, %v144_v26 }
 0x16d   :  { %v151_v28 = vsub.f32 %v140_v19, %v149_v27 }
 0x16e   :  { %v147_v29 = vpop.xlane.xlu0 %146 }
 0x16f   :  { %v150_v30 = vmul.f32 0.03125, %v147_v29  ;;  %v153_v31 = vmul.f32 %v151_v28, %v151_v28 }
 0x171   :  { %v152_v32 = vsub.f32 %v141_v24, %v150_v30  ;;  %v155_v33 = vsel %vm28_vm0, %v153_v31, 0.0 }
 0x172   :  { %156 = vadd.xlane.f32.xlu1 %v155_v33 }
 0x173   :  { %v154_v34 = vmul.f32 %v152_v32, %v152_v32 }
 0x175   :  { %v158_v35 = vsel %vm28_vm0, %v154_v34, 0.0 }
 0x176   :  { %159 = vadd.xlane.f32.xlu1 %v158_v35 }
 0x1fb   :  { %v157_v36 = vpop.xlane.xlu1 %156 }
 0x1fc   :  { %v161_v37 = vmul.f32 0.03125, %v157_v36 }
 0x1fe   :  { %v163_v38 = vadd.f32 1e-12, %v161_v37 }
 0x1ff   :  { %v160_v39 = vpop.xlane.xlu1 %159 }
 0x200   :  { %243 = vrsqrt.f32 %v163_v38  ;;  %v162_v40 = vmul.f32 0.03125, %v160_v39 }
 0x202   :  { %v164_v41 = vadd.f32 1e-12, %v162_v40 }
 0x204   :  { %245 = vrsqrt.f32 %v164_v41 }
 0x20d   :  { %v244_v42 = vpop.eup %243 }
 0x20e   :  { %v167_v44 = vmul.f32 %v244_v42, %v151_v28 }
 0x210   :  { %v176_v46 = vmul.f32 %v209_v43, %v167_v44 }
 0x211   :  { %v246_v47 = vpop.eup %245 }
 0x212   :  { %v185_v48 = vadd.f32 %v210_v45, %v176_v46  ;;  %v168_v49 = vmul.f32 %v246_v47, %v152_v32 }
 0x214   :  { %v213_v50 = vpack.c.bf16 %v185_v48, %v185_v48  ;;  %v177_v51 = vmul.f32 %v209_v43, %v168_v49 }
 0x216   :  { %196 = vst.msk [vmem:[%s331_s6] sm:$0xf] %vm195_vm3, %v213_v50  ;;  %v186_v52 = vadd.f32 %v210_v45, %v177_v51 }
 0x218   :  { %v214_v53 = vpack.c.bf16 %v186_v52, %v186_v52 }
 0x21a   :  { %197 = vst.msk [vmem:[%s331_s6 + $0x4] sm:$0xf] %vm195_vm3, %v214_v53 }

</bundles_post_ra>
